<compile_context>
chip_gen: v7x
topology: tpu7x:2x2x1
jax: 0.10.0
libtpu: 0.0.40
codegen_flags: <defaults>
</compile_context>

<pallas_src>
import numpy as np
import jax
import jax.numpy as jnp
from jax.experimental import pallas as pl
from jax.experimental.pallas import tpu as pltpu

BN_EPS = 1e-5
HIGH = jax.lax.Precision.HIGHEST   # used only by the pure-JAX reference


def _round_up(x, m):
    return ((x + m - 1) // m) * m


# ------------------------------- fused kernel --------------------------------

def fused_forward_kernel(
    x_ref,                          # (T, Bt, F)   bf16 time-major input tile
    wih1_ref, whh1_ref, b1_ref,     # LSTM1: (F,4H1) bf16, (H1,4H1) bf16, (1,4H1) f32
    bns_ref, bnb_ref,               # (1,H1) f32 folded eval-BN scale / shift
    wih2_ref, whh2_ref, b2_ref,     # LSTM2: (H1,4H2) bf16, (H2,4H2) bf16, (1,4H2) f32
    w1_ref, c1_ref,                 # FC1 (BN folded): (H2,F1) bf16, (1,F1) f32
    w2_ref, c2_ref,                 # FC2 (BN folded): (F1,F2) bf16, (1,F2) f32
    wo_ref, co_ref,                 # output linear: (1,F2) f32 row, (1,1) f32
    out_ref,                        # (Bt, 1) f32
    g1_scr,                         # (T, Bt, 4H1) f32  pre-activations, layer 1
    g2_scr,                         # (T, Bt, 4H2) f32  pre-activations, layer 2
    seq_scr,                        # (T, Bt, H1)  bf16 activated layer-1 sequence
):
    f32 = jnp.float32
    bf16 = jnp.bfloat16
    T, Bt, F = x_ref.shape
    H1 = whh1_ref.shape[0]
    H2 = whh2_ref.shape[0]

    def lstm(pre_scr, whh_ref, H, emit=None):
        whh = whh_ref[...]                         # hoist weight load out of unrolled loop
        h = jnp.zeros((Bt, H), f32)
        c = jnp.zeros((Bt, H), f32)
        # Recurrence fully unrolled (T static & small); per step only a (Bt,H)x(H,4H)
        # bf16 matmul hits the MXU, the rest is VPU/EUP work on exact-width gates.
        for t in range(T):
            gates = pre_scr[t] + jnp.dot(h.astype(bf16), whh,
                                         preferred_element_type=f32)
            tg = jnp.tanh(gates)                   # one EUP pass over the (Bt,4H) slab
            i_g = 0.5 * tg[:, 0 * H:1 * H] + 0.5   # sigmoid = 0.5*tanh(a/2)+0.5
            f_g = 0.5 * tg[:, 1 * H:2 * H] + 0.5   # (0.5 pre-folded into i/f/o columns)
            g_g = tg[:, 2 * H:3 * H]
            o_g = 0.5 * tg[:, 3 * H:4 * H] + 0.5
            c = f_g * c + i_g * g_g
            h = o_g * jnp.tanh(c)
            if emit is not None:
                emit(t, h)
        return h

    # ---- LSTM layer 1: hoisted input projection (one matmul over all timesteps) ----
    x2d = x_ref[...].reshape(T * Bt, F)
    g1_scr[...] = (jnp.dot(x2d, wih1_ref[...], preferred_element_type=f32)
                   + b1_ref[...]).reshape(T, Bt, 4 * H1)

    # hoisted folded-BN broadcasts (JAX does not CSE broadcast_in_dim inside the loop)
    bn_s = jnp.broadcast_to(bns_ref[...], (Bt, H1))
    bn_b = jnp.broadcast_to(bnb_ref[...], (Bt, H1))

    def emit_seq(t, h):
        # fused eval-BatchNorm + ReLU on the layer-1 hidden states, stored bf16
        seq_scr[t] = jnp.maximum(h * bn_s + bn_b, 0.0).astype(bf16)

    lstm(g1_scr, whh1_ref, H1, emit=emit_seq)

    # ---- LSTM layer 2: hoisted input projection; only the final hidden state kept ----
    a2d = seq_scr[...].reshape(T * Bt, H1)
    g2_scr[...] = (jnp.dot(a2d, wih2_ref[...], preferred_element_type=f32)
                   + b2_ref[...]).reshape(T, Bt, 4 * H2)
    h2 = lstm(g2_scr, whh2_ref, H2)

    # ---- FC head: [Linear (+folded BN) -> ReLU] x2 -> VPU dot -> sigmoid ----
    y = jnp.maximum(jnp.dot(h2.astype(bf16), w1_ref[...],
                            preferred_element_type=f32) + c1_ref[...], 0.0)
    y = jnp.maximum(jnp.dot(y.astype(bf16), w2_ref[...],
                            preferred_element_type=f32) + c2_ref[...], 0.0)
    # final F2 -> 1 projection as VPU multiply + lane reduction (avoids an N=1 MXU dot)
    z = jnp.sum(y * wo_ref[...], axis=-1, keepdims=True) + co_ref[...]
    out_ref[...] = jax.nn.sigmoid(z)


# --------------------------- host-side param packing --------------------------

def _pack_lstm(w_ih, w_hh, bias):
    """Repack torch-layout LSTM params (gate order i,f,g,o), exact gate width = H.

    The 0.5 of sigmoid(a) = 0.5*tanh(a/2) + 0.5 is pre-folded into the i/f/o columns so
    the kernel needs a single tanh over the whole gate slab.  Weights stored bf16
    (f32 accumulation in-kernel); biases stay f32.
    """
    H = w_hh.shape[1]
    col_scale = jnp.concatenate(
        [jnp.full((H,), s, jnp.float32) for s in (0.5, 0.5, 1.0, 0.5)])   # i,f,g,o
    wih_p = (w_ih.T * col_scale[None, :]).astype(jnp.bfloat16)            # (in, 4H)
    whh_p = (w_hh.T * col_scale[None, :]).astype(jnp.bfloat16)            # (H, 4H)
    b_p = (bias * col_scale).reshape(1, 4 * H).astype(jnp.float32)        # (1, 4H)
    return wih_p, whh_p, b_p


def _fold_fc(W, b, gamma, beta, mean, var):
    """Fold eval-mode BatchNorm1d into the preceding Linear; bf16 weights, f32 bias."""
    s = gamma * jax.lax.rsqrt(var + BN_EPS)
    w_eff = (W.T * s[None, :]).astype(jnp.bfloat16)                       # (in, out)
    b_eff = (b * s + beta - mean * s).reshape(1, -1).astype(jnp.float32)  # (1, out)
    return w_eff, b_eff


# ----------------------------------- wrapper ----------------------------------

def forward(params, x_btf, *, batch_tile=None):
    """Eval-mode forward, fused into a single Pallas kernel. x_btf: (B, T, F) f32."""
    assert len(params["lstm"]) == 2 and len(params["fc"]) == 2, \
        "fused kernel is specialised to the default architecture (2 LSTM + 2 FC layers)"
    B, T, F = x_btf.shape
    (w_ih1, w_hh1, b1), (w_ih2, w_hh2, b2) = params["lstm"]
    H1, H2 = w_hh1.shape[1], w_hh2.shape[1]
    fc1, fc2 = params["fc"]
    F1, F2 = fc1[0].shape[0], fc2[0].shape[0]

    wih1_p, whh1_p, b1_p = _pack_lstm(w_ih1, w_hh1, b1)
    wih2_p, whh2_p, b2_p = _pack_lstm(w_ih2, w_hh2, b2)

    gamma, beta, mean, var = params["bn"][0]
    s = gamma * jax.lax.rsqrt(var + BN_EPS)
    bns = s.reshape(1, H1).astype(jnp.float32)
    bnb = (beta - mean * s).reshape(1, H1).astype(jnp.float32)

    w1_p, c1_p = _fold_fc(*fc1)
    w2_p, c2_p = _fold_fc(*fc2)
    Wo, bo = params["fc_out"]
    wo_p = Wo.reshape(1, F2).astype(jnp.float32)
    co_p = bo.reshape(1, 1).astype(jnp.float32)

    # ---- batch tiling: sublane-aligned tiles, sharded across TensorCores on v7x ----
    if batch_tile is None:
        batch_tile = min(64, _round_up(B, 8))    # keep per-step vreg working set bounded
    n_tiles = pl.cdiv(B, batch_tile)
    B_pad = n_tiles * batch_tile

    # time-major, batch-padded, bf16 input for the hoisted projection + aligned per-step rows
    x_tbf = jnp.transpose(
        jnp.pad(x_btf, ((0, B_pad - B), (0, 0), (0, 0))), (1, 0, 2)).astype(jnp.bfloat16)

    weights = (wih1_p, whh1_p, b1_p, bns, bnb, wih2_p, whh2_p, b2_p,
               w1_p, c1_p, w2_p, c2_p, wo_p, co_p)

    scratch_shapes = [
        pltpu.VMEM((T, batch_tile, 4 * H1), jnp.float32),
        pltpu.VMEM((T, batch_tile, 4 * H2), jnp.float32),
        pltpu.VMEM((T, batch_tile, H1), jnp.bfloat16),
    ]

    # explicit VMEM budget: double-buffered x/out tiles + resident weights + scratch
    def nbytes(a):
        return int(np.prod(a.shape)) * jnp.dtype(a.dtype).itemsize

    tile_bytes = (2 * T * batch_tile * F * 2            # x tile, bf16, double-buffered
                  + 2 * batch_tile * 4                   # out tile, f32, double-buffered
                  + sum(nbytes(w) for w in weights)      # resident weights
                  + T * batch_tile * (4 * H1 * 4 + 4 * H2 * 4 + H1 * 2))   # scratch
    vmem_limit = int(min(48 * 2**20, max(16 * 2**20, 2 * tile_bytes)))

    flops = (2 * T * B_pad * (F * 4 * H1 + H1 * 4 * H1 + H1 * 4 * H2 + H2 * 4 * H2)
             + 2 * B_pad * (H2 * F1 + F1 * F2 + F2))
    transcendentals = T * B_pad * (5 * H1 + 5 * H2) + B_pad
    bytes_accessed = nbytes(x_tbf) + sum(nbytes(w) for w in weights) + B_pad * 4

    grid_spec = pltpu.PrefetchScalarGridSpec(
        num_scalar_prefetch=0,
        grid=(n_tiles,),
        in_specs=[pl.BlockSpec((T, batch_tile, F), lambda b: (0, b, 0))]
                 + [pl.BlockSpec(w.shape, lambda b: (0, 0)) for w in weights],
        out_specs=pl.BlockSpec((batch_tile, 1), lambda b: (b, 0)),
        scratch_shapes=scratch_shapes,
    )

    out = pl.pallas_call(
        fused_forward_kernel,
        out_shape=jax.ShapeDtypeStruct((B_pad, 1), jnp.float32),
        grid_spec=grid_spec,
        compiler_params=pltpu.CompilerParams(
            dimension_semantics=("parallel",),
            vmem_limit_bytes=vmem_limit),
        cost_estimate=pl.CostEstimate(
            flops=int(flops),
            transcendentals=int(transcendentals),
            bytes_accessed=int(bytes_accessed)),
    )(x_tbf, *weights)
    return out[:B, 0]


# ------------------------------- parameter init --------------------------------

def init_params(key, input_size=23, hidden_sizes=(64, 32), fc_layers=(64, 32)):
    keys = iter(jax.random.split(key, 40))
    nxt = lambda: next(keys)
    p = {"lstm": [], "bn": [], "fc": []}
    in_sz = input_size
    for H in hidden_sizes:
        w_ih = 0.1 * jax.random.normal(nxt(), (4 * H, in_sz), jnp.float32)
        w_hh = 0.1 * jax.random.normal(nxt(), (4 * H, H), jnp.float32)
        b_ih = 0.1 * jax.random.normal(nxt(), (4 * H,), jnp.float32)
        b_hh = 0.1 * jax.random.normal(nxt(), (4 * H,), jnp.float32)
        p["lstm"].append((w_ih, w_hh, b_ih + b_hh))
        in_sz = H
    for H in hidden_sizes[:-1]:
        gamma = 1.0 + 0.1 * jax.random.normal(nxt(), (H,), jnp.float32)
        beta = 0.1 * jax.random.normal(nxt(), (H,), jnp.float32)
        mean = 0.1 * jax.random.normal(nxt(), (H,), jnp.float32)
        var = 1.0 + 0.1 * jnp.abs(jax.random.normal(nxt(), (H,), jnp.float32))
        p["bn"].append((gamma, beta, mean, var))
    fc_in = hidden_sizes[-1]
    for Fc in fc_layers:
        W = 0.1 * jax.random.normal(nxt(), (Fc, fc_in), jnp.float32)
        b = 0.1 * jax.random.normal(nxt(), (Fc,), jnp.float32)
        gamma = 1.0 + 0.1 * jax.random.normal(nxt(), (Fc,), jnp.float32)
        beta = 0.1 * jax.random.normal(nxt(), (Fc,), jnp.float32)
        mean = 0.1 * jax.random.normal(nxt(), (Fc,), jnp.float32)
        var = 1.0 + 0.1 * jnp.abs(jax.random.normal(nxt(), (Fc,), jnp.float32))
        p["fc"].append((W, b, gamma, beta, mean, var))
        fc_in = Fc
    p["fc_out"] = (0.1 * jax.random.normal(nxt(), (1, fc_in), jnp.float32),
                   0.1 * jax.random.normal(nxt(), (1,), jnp.float32))
    return p


# ----------------------------- pure-JAX reference ------------------------------

def forward_ref(params, x_btf):
    x = x_btf
    n_lstm = len(params["lstm"])
    for i, (w_ih, w_hh, b) in enumerate(params["lstm"]):
        B, T, _ = x.shape
        H = w_hh.shape[1]
        h = jnp.zeros((B, H), jnp.float32)
        c = jnp.zeros((B, H), jnp.float32)
        outs = []
        for t in range(T):
            gates = (jnp.dot(x[:, t, :], w_ih.T, precision=HIGH)
                     + jnp.dot(h, w_hh.T, precision=HIGH) + b)
            i_g = jax.nn.sigmoid(gates[:, 0 * H:1 * H])
            f_g = jax.nn.sigmoid(gates[:, 1 * H:2 * H])
            g_g = jnp.tanh(gates[:, 2 * H:3 * H])
            o_g = jax.nn.sigmoid(gates[:, 3 * H:4 * H])
            c = f_g * c + i_g * g_g
            h = o_g * jnp.tanh(c)
            outs.append(h)
        seq = jnp.stack(outs, axis=1)
        if i < n_lstm - 1:
            g, be, m, v = params["bn"][i]
            seq = (seq - m) * (g / jnp.sqrt(v + BN_EPS)) + be
            x = jnp.maximum(seq, 0.0)
        else:
            x = h
    for (W, b, g, be, m, v) in params["fc"]:
        x = jnp.dot(x, W.T, precision=HIGH) + b
        x = (x - m) * (g / jnp.sqrt(v + BN_EPS)) + be
        x = jnp.maximum(x, 0.0)
    Wo, bo = params["fc_out"]
    x = jax.nn.sigmoid(jnp.dot(x, Wo.T, precision=HIGH) + bo)
    return jnp.squeeze(x, axis=-1)


# ------------------------------------ main -------------------------------------

if __name__ == "__main__":
    key = jax.random.PRNGKey(0)
    k_param, k_x = jax.random.split(key)
    B, T, F = 4, 8, 23                                      # matches input_size=23
    params = init_params(k_param)
    x = jax.random.normal(k_x, (B, T, F), jnp.float32)

    out = jax.block_until_ready(jax.jit(forward)(params, x))
    ref = jax.block_until_ready(forward_ref(params, x))

    assert out.shape == (B,), f"bad output shape {out.shape}"
    # Tolerance re-validated for bf16 matmul operands (f32 accumulation) vs. the
    # full-f32 HIGHEST-precision reference; sigmoid outputs live in [0, 1].
    assert np.allclose(np.asarray(out), np.asarray(ref), atol=2e-2, rtol=2e-2), \
        f"mismatch: {out} vs {ref}"
    print("KERNEL_OK")
</pallas_src>

<mosaic_0001>
module attributes {stable_mosaic.version = 11 : i64} {
  func.func @fused_forward_kernel(%arg0: i32, %arg1: memref<8x8x23xbf16, #tpu.memory_space<vmem>>, %arg2: memref<23x256xbf16, #tpu.memory_space<vmem>>, %arg3: memref<64x256xbf16, #tpu.memory_space<vmem>>, %arg4: memref<1x256xf32, #tpu.memory_space<vmem>>, %arg5: memref<1x64xf32, #tpu.memory_space<vmem>>, %arg6: memref<1x64xf32, #tpu.memory_space<vmem>>, %arg7: memref<64x128xbf16, #tpu.memory_space<vmem>>, %arg8: memref<32x128xbf16, #tpu.memory_space<vmem>>, %arg9: memref<1x128xf32, #tpu.memory_space<vmem>>, %arg10: memref<32x64xbf16, #tpu.memory_space<vmem>>, %arg11: memref<1x64xf32, #tpu.memory_space<vmem>>, %arg12: memref<64x32xbf16, #tpu.memory_space<vmem>>, %arg13: memref<1x32xf32, #tpu.memory_space<vmem>>, %arg14: memref<1x32xf32, #tpu.memory_space<vmem>>, %arg15: memref<1x1xf32, #tpu.memory_space<vmem>>, %arg16: memref<8x1xf32, #tpu.memory_space<vmem>>, %arg17: memref<8x8x256xf32, #tpu.memory_space<vmem>>, %arg18: memref<8x8x128xf32, #tpu.memory_space<vmem>>, %arg19: memref<8x8x64xbf16, #tpu.memory_space<vmem>>) attributes {dimension_semantics = [#tpu.dimension_semantics<parallel>], iteration_bounds = array<i64: 1>, scalar_prefetch = 0 : i64, scratch_operands = 3 : i64, tpu.core_type = #tpu.core_type<tc>, window_params = [{transform_indices = @transform_0, window_bounds = array<i64: 8, 8, 23>}, {pipeline_mode = #tpu.pipeline_mode<synchronous>, transform_indices = @transform_1, window_bounds = array<i64: 23, 256>}, {pipeline_mode = #tpu.pipeline_mode<synchronous>, transform_indices = @transform_2, window_bounds = array<i64: 64, 256>}, {pipeline_mode = #tpu.pipeline_mode<synchronous>, transform_indices = @transform_3, window_bounds = array<i64: 1, 256>}, {pipeline_mode = #tpu.pipeline_mode<synchronous>, transform_indices = @transform_4, window_bounds = array<i64: 1, 64>}, {pipeline_mode = #tpu.pipeline_mode<synchronous>, transform_indices = @transform_5, window_bounds = array<i64: 1, 64>}, {pipeline_mode = #tpu.pipeline_mode<synchronous>, transform_indices = @transform_6, window_bounds = array<i64: 64, 128>}, {pipeline_mode = #tpu.pipeline_mode<synchronous>, transform_indices = @transform_7, window_bounds = array<i64: 32, 128>}, {pipeline_mode = #tpu.pipeline_mode<synchronous>, transform_indices = @transform_8, window_bounds = array<i64: 1, 128>}, {pipeline_mode = #tpu.pipeline_mode<synchronous>, transform_indices = @transform_9, window_bounds = array<i64: 32, 64>}, {pipeline_mode = #tpu.pipeline_mode<synchronous>, transform_indices = @transform_10, window_bounds = array<i64: 1, 64>}, {pipeline_mode = #tpu.pipeline_mode<synchronous>, transform_indices = @transform_11, window_bounds = array<i64: 64, 32>}, {pipeline_mode = #tpu.pipeline_mode<synchronous>, transform_indices = @transform_12, window_bounds = array<i64: 1, 32>}, {pipeline_mode = #tpu.pipeline_mode<synchronous>, transform_indices = @transform_13, window_bounds = array<i64: 1, 32>}, {pipeline_mode = #tpu.pipeline_mode<synchronous>, transform_indices = @transform_14, window_bounds = array<i64: 1, 1>}, {transform_indices = @transform_15, window_bounds = array<i64: 8, 1>}]} {
    %c0 = arith.constant 0 : index
    %c0_0 = arith.constant 0 : index
    %c0_1 = arith.constant 0 : index
    %0 = vector.load %arg1[%c0, %c0_0, %c0_1] : memref<8x8x23xbf16, #tpu.memory_space<vmem>>, vector<8x8x23xbf16>
    %1 = vector.shape_cast %0 : vector<8x8x23xbf16> to vector<64x23xbf16>
    %c0_2 = arith.constant 0 : index
    %c0_3 = arith.constant 0 : index
    %2 = vector.load %arg2[%c0_2, %c0_3] : memref<23x256xbf16, #tpu.memory_space<vmem>>, vector<23x256xbf16>
    %cst = arith.constant dense<0.000000e+00> : vector<64x256xf32>
    %3 = tpu.matmul %1, %2, %cst {dimension_numbers = #tpu.dot_dimension_numbers<[1], [0], [0], [1], [0, 0, 1, 1], [], []>} : vector<64x23xbf16>, vector<23x256xbf16>, vector<64x256xf32> -> vector<64x256xf32>
    %c0_4 = arith.constant 0 : index
    %c0_5 = arith.constant 0 : index
    %4 = vector.load %arg4[%c0_4, %c0_5] : memref<1x256xf32, #tpu.memory_space<vmem>>, vector<1x256xf32>
    %5 = vector.broadcast %4 : vector<1x256xf32> to vector<64x256xf32>
    %6 = arith.addf %3, %5 : vector<64x256xf32>
    %7 = vector.shape_cast %6 : vector<64x256xf32> to vector<8x8x256xf32>
    %c0_6 = arith.constant 0 : index
    %c0_7 = arith.constant 0 : index
    %c0_8 = arith.constant 0 : index
    %8 = vector.load %arg17[%c0_6, %c0_7, %c0_8] : memref<8x8x256xf32, #tpu.memory_space<vmem>>, vector<8x8x256xf32>
    tpu.vector_store %arg17[%c0_6, %c0_7, %c0_8], %7 {strides = array<i32>} : memref<8x8x256xf32, #tpu.memory_space<vmem>>, vector<8x8x256xf32>,
    %c0_9 = arith.constant 0 : index
    %c0_10 = arith.constant 0 : index
    %9 = vector.load %arg5[%c0_9, %c0_10] : memref<1x64xf32, #tpu.memory_space<vmem>>, vector<1x64xf32>
    %10 = vector.shape_cast %9 : vector<1x64xf32> to vector<1x64xf32>
    %11 = vector.broadcast %10 : vector<1x64xf32> to vector<8x64xf32>
    %c0_11 = arith.constant 0 : index
    %c0_12 = arith.constant 0 : index
    %12 = vector.load %arg6[%c0_11, %c0_12] : memref<1x64xf32, #tpu.memory_space<vmem>>, vector<1x64xf32>
    %13 = vector.shape_cast %12 : vector<1x64xf32> to vector<1x64xf32>
    %14 = vector.broadcast %13 : vector<1x64xf32> to vector<8x64xf32>
    %c0_13 = arith.constant 0 : index
    %c0_14 = arith.constant 0 : index
    %15 = vector.load %arg3[%c0_13, %c0_14] : memref<64x256xbf16, #tpu.memory_space<vmem>>, vector<64x256xbf16>
    %cst_15 = arith.constant 0.000000e+00 : f32
    %16 = vector.broadcast %cst_15 : f32 to vector<8x64xf32>
    %cst_16 = arith.constant 0.000000e+00 : f32
    %17 = vector.broadcast %cst_16 : f32 to vector<8x64xf32>
    %c0_17 = arith.constant 0 : index
    %c0_18 = arith.constant 0 : index
    %c0_19 = arith.constant 0 : index
    %18 = vector.load %arg17[%c0_17, %c0_18, %c0_19] : memref<8x8x256xf32, #tpu.memory_space<vmem>>, vector<1x8x256xf32>
    %19 = vector.shape_cast %18 : vector<1x8x256xf32> to vector<8x256xf32>
    %20 = arith.truncf %16 : vector<8x64xf32> to vector<8x64xbf16>
    %cst_20 = arith.constant dense<0.000000e+00> : vector<8x256xf32>
    %21 = tpu.matmul %20, %15, %cst_20 {dimension_numbers = #tpu.dot_dimension_numbers<[1], [0], [0], [1], [0, 0, 1, 1], [], []>} : vector<8x64xbf16>, vector<64x256xbf16>, vector<8x256xf32> -> vector<8x256xf32>
    %22 = arith.addf %19, %21 : vector<8x256xf32>
    %23 = math.tanh %22 : vector<8x256xf32>
    %24 = vector.extract_strided_slice %23 {offsets = [0, 0], sizes = [8, 64], strides = [1, 1]} : vector<8x256xf32> to vector<8x64xf32>
    %cst_21 = arith.constant 5.000000e-01 : f32
    %25 = vector.broadcast %cst_21 : f32 to vector<8x64xf32>
    %26 = arith.mulf %25, %24 : vector<8x64xf32>
    %cst_22 = arith.constant 5.000000e-01 : f32
    %27 = vector.broadcast %cst_22 : f32 to vector<8x64xf32>
    %28 = arith.addf %26, %27 : vector<8x64xf32>
    %29 = vector.extract_strided_slice %23 {offsets = [0, 64], sizes = [8, 64], strides = [1, 1]} : vector<8x256xf32> to vector<8x64xf32>
    %cst_23 = arith.constant 5.000000e-01 : f32
    %30 = vector.broadcast %cst_23 : f32 to vector<8x64xf32>
    %31 = arith.mulf %30, %29 : vector<8x64xf32>
    %cst_24 = arith.constant 5.000000e-01 : f32
    %32 = vector.broadcast %cst_24 : f32 to vector<8x64xf32>
    %33 = arith.addf %31, %32 : vector<8x64xf32>
    %34 = vector.extract_strided_slice %23 {offsets = [0, 128], sizes = [8, 64], strides = [1, 1]} : vector<8x256xf32> to vector<8x64xf32>
    %35 = vector.extract_strided_slice %23 {offsets = [0, 192], sizes = [8, 64], strides = [1, 1]} : vector<8x256xf32> to vector<8x64xf32>
    %cst_25 = arith.constant 5.000000e-01 : f32
    %36 = vector.broadcast %cst_25 : f32 to vector<8x64xf32>
    %37 = arith.mulf %36, %35 : vector<8x64xf32>
    %cst_26 = arith.constant 5.000000e-01 : f32
    %38 = vector.broadcast %cst_26 : f32 to vector<8x64xf32>
    %39 = arith.addf %37, %38 : vector<8x64xf32>
    %40 = arith.mulf %33, %17 : vector<8x64xf32>
    %41 = arith.mulf %28, %34 : vector<8x64xf32>
    %42 = arith.addf %40, %41 : vector<8x64xf32>
    %43 = math.tanh %42 : vector<8x64xf32>
    %44 = arith.mulf %39, %43 : vector<8x64xf32>
    %45 = arith.mulf %44, %11 : vector<8x64xf32>
    %46 = arith.addf %45, %14 : vector<8x64xf32>
    %cst_27 = arith.constant 0.000000e+00 : f32
    %47 = vector.broadcast %cst_27 : f32 to vector<8x64xf32>
    %48 = arith.maximumf %46, %47 : vector<8x64xf32>
    %49 = arith.truncf %48 : vector<8x64xf32> to vector<8x64xbf16>
    %c0_28 = arith.constant 0 : index
    %c0_29 = arith.constant 0 : index
    %c0_30 = arith.constant 0 : index
    %50 = vector.load %arg19[%c0_28, %c0_29, %c0_30] : memref<8x8x64xbf16, #tpu.memory_space<vmem>>, vector<1x8x64xbf16>
    %51 = vector.shape_cast %50 : vector<1x8x64xbf16> to vector<8x64xbf16>
    %52 = vector.shape_cast %49 : vector<8x64xbf16> to vector<1x8x64xbf16>
    tpu.vector_store %arg19[%c0_28, %c0_29, %c0_30], %52 {strides = array<i32>} : memref<8x8x64xbf16, #tpu.memory_space<vmem>>, vector<1x8x64xbf16>,
    %c1 = arith.constant 1 : index
    %c0_31 = arith.constant 0 : index
    %c0_32 = arith.constant 0 : index
    %53 = vector.load %arg17[%c1, %c0_31, %c0_32] : memref<8x8x256xf32, #tpu.memory_space<vmem>>, vector<1x8x256xf32>
    %54 = vector.shape_cast %53 : vector<1x8x256xf32> to vector<8x256xf32>
    %55 = arith.truncf %44 : vector<8x64xf32> to vector<8x64xbf16>
    %cst_33 = arith.constant dense<0.000000e+00> : vector<8x256xf32>
    %56 = tpu.matmul %55, %15, %cst_33 {dimension_numbers = #tpu.dot_dimension_numbers<[1], [0], [0], [1], [0, 0, 1, 1], [], []>} : vector<8x64xbf16>, vector<64x256xbf16>, vector<8x256xf32> -> vector<8x256xf32>
    %57 = arith.addf %54, %56 : vector<8x256xf32>
    %58 = math.tanh %57 : vector<8x256xf32>
    %59 = vector.extract_strided_slice %58 {offsets = [0, 0], sizes = [8, 64], strides = [1, 1]} : vector<8x256xf32> to vector<8x64xf32>
    %cst_34 = arith.constant 5.000000e-01 : f32
    %60 = vector.broadcast %cst_34 : f32 to vector<8x64xf32>
    %61 = arith.mulf %60, %59 : vector<8x64xf32>
    %cst_35 = arith.constant 5.000000e-01 : f32
    %62 = vector.broadcast %cst_35 : f32 to vector<8x64xf32>
    %63 = arith.addf %61, %62 : vector<8x64xf32>
    %64 = vector.extract_strided_slice %58 {offsets = [0, 64], sizes = [8, 64], strides = [1, 1]} : vector<8x256xf32> to vector<8x64xf32>
    %cst_36 = arith.constant 5.000000e-01 : f32
    %65 = vector.broadcast %cst_36 : f32 to vector<8x64xf32>
    %66 = arith.mulf %65, %64 : vector<8x64xf32>
    %cst_37 = arith.constant 5.000000e-01 : f32
    %67 = vector.broadcast %cst_37 : f32 to vector<8x64xf32>
    %68 = arith.addf %66, %67 : vector<8x64xf32>
    %69 = vector.extract_strided_slice %58 {offsets = [0, 128], sizes = [8, 64], strides = [1, 1]} : vector<8x256xf32> to vector<8x64xf32>
    %70 = vector.extract_strided_slice %58 {offsets = [0, 192], sizes = [8, 64], strides = [1, 1]} : vector<8x256xf32> to vector<8x64xf32>
    %cst_38 = arith.constant 5.000000e-01 : f32
    %71 = vector.broadcast %cst_38 : f32 to vector<8x64xf32>
    %72 = arith.mulf %71, %70 : vector<8x64xf32>
    %cst_39 = arith.constant 5.000000e-01 : f32
    %73 = vector.broadcast %cst_39 : f32 to vector<8x64xf32>
    %74 = arith.addf %72, %73 : vector<8x64xf32>
    %75 = arith.mulf %68, %42 : vector<8x64xf32>
    %76 = arith.mulf %63, %69 : vector<8x64xf32>
    %77 = arith.addf %75, %76 : vector<8x64xf32>
    %78 = math.tanh %77 : vector<8x64xf32>
    %79 = arith.mulf %74, %78 : vector<8x64xf32>
    %80 = arith.mulf %79, %11 : vector<8x64xf32>
    %81 = arith.addf %80, %14 : vector<8x64xf32>
    %cst_40 = arith.constant 0.000000e+00 : f32
    %82 = vector.broadcast %cst_40 : f32 to vector<8x64xf32>
    %83 = arith.maximumf %81, %82 : vector<8x64xf32>
    %84 = arith.truncf %83 : vector<8x64xf32> to vector<8x64xbf16>
    %c1_41 = arith.constant 1 : index
    %c0_42 = arith.constant 0 : index
    %c0_43 = arith.constant 0 : index
    %85 = vector.load %arg19[%c1_41, %c0_42, %c0_43] : memref<8x8x64xbf16, #tpu.memory_space<vmem>>, vector<1x8x64xbf16>
    %86 = vector.shape_cast %85 : vector<1x8x64xbf16> to vector<8x64xbf16>
    %87 = vector.shape_cast %84 : vector<8x64xbf16> to vector<1x8x64xbf16>
    tpu.vector_store %arg19[%c1_41, %c0_42, %c0_43], %87 {strides = array<i32>} : memref<8x8x64xbf16, #tpu.memory_space<vmem>>, vector<1x8x64xbf16>,
    %c2 = arith.constant 2 : index
    %c0_44 = arith.constant 0 : index
    %c0_45 = arith.constant 0 : index
    %88 = vector.load %arg17[%c2, %c0_44, %c0_45] : memref<8x8x256xf32, #tpu.memory_space<vmem>>, vector<1x8x256xf32>
    %89 = vector.shape_cast %88 : vector<1x8x256xf32> to vector<8x256xf32>
    %90 = arith.truncf %79 : vector<8x64xf32> to vector<8x64xbf16>
    %cst_46 = arith.constant dense<0.000000e+00> : vector<8x256xf32>
    %91 = tpu.matmul %90, %15, %cst_46 {dimension_numbers = #tpu.dot_dimension_numbers<[1], [0], [0], [1], [0, 0, 1, 1], [], []>} : vector<8x64xbf16>, vector<64x256xbf16>, vector<8x256xf32> -> vector<8x256xf32>
    %92 = arith.addf %89, %91 : vector<8x256xf32>
    %93 = math.tanh %92 : vector<8x256xf32>
    %94 = vector.extract_strided_slice %93 {offsets = [0, 0], sizes = [8, 64], strides = [1, 1]} : vector<8x256xf32> to vector<8x64xf32>
    %cst_47 = arith.constant 5.000000e-01 : f32
    %95 = vector.broadcast %cst_47 : f32 to vector<8x64xf32>
    %96 = arith.mulf %95, %94 : vector<8x64xf32>
    %cst_48 = arith.constant 5.000000e-01 : f32
    %97 = vector.broadcast %cst_48 : f32 to vector<8x64xf32>
    %98 = arith.addf %96, %97 : vector<8x64xf32>
    %99 = vector.extract_strided_slice %93 {offsets = [0, 64], sizes = [8, 64], strides = [1, 1]} : vector<8x256xf32> to vector<8x64xf32>
    %cst_49 = arith.constant 5.000000e-01 : f32
    %100 = vector.broadcast %cst_49 : f32 to vector<8x64xf32>
    %101 = arith.mulf %100, %99 : vector<8x64xf32>
    %cst_50 = arith.constant 5.000000e-01 : f32
    %102 = vector.broadcast %cst_50 : f32 to vector<8x64xf32>
    %103 = arith.addf %101, %102 : vector<8x64xf32>
    %104 = vector.extract_strided_slice %93 {offsets = [0, 128], sizes = [8, 64], strides = [1, 1]} : vector<8x256xf32> to vector<8x64xf32>
    %105 = vector.extract_strided_slice %93 {offsets = [0, 192], sizes = [8, 64], strides = [1, 1]} : vector<8x256xf32> to vector<8x64xf32>
    %cst_51 = arith.constant 5.000000e-01 : f32
    %106 = vector.broadcast %cst_51 : f32 to vector<8x64xf32>
    %107 = arith.mulf %106, %105 : vector<8x64xf32>
    %cst_52 = arith.constant 5.000000e-01 : f32
    %108 = vector.broadcast %cst_52 : f32 to vector<8x64xf32>
    %109 = arith.addf %107, %108 : vector<8x64xf32>
    %110 = arith.mulf %103, %77 : vector<8x64xf32>
    %111 = arith.mulf %98, %104 : vector<8x64xf32>
    %112 = arith.addf %110, %111 : vector<8x64xf32>
    %113 = math.tanh %112 : vector<8x64xf32>
    %114 = arith.mulf %109, %113 : vector<8x64xf32>
    %115 = arith.mulf %114, %11 : vector<8x64xf32>
    %116 = arith.addf %115, %14 : vector<8x64xf32>
    %cst_53 = arith.constant 0.000000e+00 : f32
    %117 = vector.broadcast %cst_53 : f32 to vector<8x64xf32>
    %118 = arith.maximumf %116, %117 : vector<8x64xf32>
    %119 = arith.truncf %118 : vector<8x64xf32> to vector<8x64xbf16>
    %c2_54 = arith.constant 2 : index
    %c0_55 = arith.constant 0 : index
    %c0_56 = arith.constant 0 : index
    %120 = vector.load %arg19[%c2_54, %c0_55, %c0_56] : memref<8x8x64xbf16, #tpu.memory_space<vmem>>, vector<1x8x64xbf16>
    %121 = vector.shape_cast %120 : vector<1x8x64xbf16> to vector<8x64xbf16>
    %122 = vector.shape_cast %119 : vector<8x64xbf16> to vector<1x8x64xbf16>
    tpu.vector_store %arg19[%c2_54, %c0_55, %c0_56], %122 {strides = array<i32>} : memref<8x8x64xbf16, #tpu.memory_space<vmem>>, vector<1x8x64xbf16>,
    %c3 = arith.constant 3 : index
    %c0_57 = arith.constant 0 : index
    %c0_58 = arith.constant 0 : index
    %123 = vector.load %arg17[%c3, %c0_57, %c0_58] : memref<8x8x256xf32, #tpu.memory_space<vmem>>, vector<1x8x256xf32>
    %124 = vector.shape_cast %123 : vector<1x8x256xf32> to vector<8x256xf32>
    %125 = arith.truncf %114 : vector<8x64xf32> to vector<8x64xbf16>
    %cst_59 = arith.constant dense<0.000000e+00> : vector<8x256xf32>
    %126 = tpu.matmul %125, %15, %cst_59 {dimension_numbers = #tpu.dot_dimension_numbers<[1], [0], [0], [1], [0, 0, 1, 1], [], []>} : vector<8x64xbf16>, vector<64x256xbf16>, vector<8x256xf32> -> vector<8x256xf32>
    %127 = arith.addf %124, %126 : vector<8x256xf32>
    %128 = math.tanh %127 : vector<8x256xf32>
    %129 = vector.extract_strided_slice %128 {offsets = [0, 0], sizes = [8, 64], strides = [1, 1]} : vector<8x256xf32> to vector<8x64xf32>
    %cst_60 = arith.constant 5.000000e-01 : f32
    %130 = vector.broadcast %cst_60 : f32 to vector<8x64xf32>
    %131 = arith.mulf %130, %129 : vector<8x64xf32>
    %cst_61 = arith.constant 5.000000e-01 : f32
    %132 = vector.broadcast %cst_61 : f32 to vector<8x64xf32>
    %133 = arith.addf %131, %132 : vector<8x64xf32>
    %134 = vector.extract_strided_slice %128 {offsets = [0, 64], sizes = [8, 64], strides = [1, 1]} : vector<8x256xf32> to vector<8x64xf32>
    %cst_62 = arith.constant 5.000000e-01 : f32
    %135 = vector.broadcast %cst_62 : f32 to vector<8x64xf32>
    %136 = arith.mulf %135, %134 : vector<8x64xf32>
    %cst_63 = arith.constant 5.000000e-01 : f32
    %137 = vector.broadcast %cst_63 : f32 to vector<8x64xf32>
    %138 = arith.addf %136, %137 : vector<8x64xf32>
    %139 = vector.extract_strided_slice %128 {offsets = [0, 128], sizes = [8, 64], strides = [1, 1]} : vector<8x256xf32> to vector<8x64xf32>
    %140 = vector.extract_strided_slice %128 {offsets = [0, 192], sizes = [8, 64], strides = [1, 1]} : vector<8x256xf32> to vector<8x64xf32>
    %cst_64 = arith.constant 5.000000e-01 : f32
    %141 = vector.broadcast %cst_64 : f32 to vector<8x64xf32>
    %142 = arith.mulf %141, %140 : vector<8x64xf32>
    %cst_65 = arith.constant 5.000000e-01 : f32
    %143 = vector.broadcast %cst_65 : f32 to vector<8x64xf32>
    %144 = arith.addf %142, %143 : vector<8x64xf32>
    %145 = arith.mulf %138, %112 : vector<8x64xf32>
    %146 = arith.mulf %133, %139 : vector<8x64xf32>
    %147 = arith.addf %145, %146 : vector<8x64xf32>
    %148 = math.tanh %147 : vector<8x64xf32>
    %149 = arith.mulf %144, %148 : vector<8x64xf32>
    %150 = arith.mulf %149, %11 : vector<8x64xf32>
    %151 = arith.addf %150, %14 : vector<8x64xf32>
    %cst_66 = arith.constant 0.000000e+00 : f32
    %152 = vector.broadcast %cst_66 : f32 to vector<8x64xf32>
    %153 = arith.maximumf %151, %152 : vector<8x64xf32>
    %154 = arith.truncf %153 : vector<8x64xf32> to vector<8x64xbf16>
    %c3_67 = arith.constant 3 : index
    %c0_68 = arith.constant 0 : index
    %c0_69 = arith.constant 0 : index
    %155 = vector.load %arg19[%c3_67, %c0_68, %c0_69] : memref<8x8x64xbf16, #tpu.memory_space<vmem>>, vector<1x8x64xbf16>
    %156 = vector.shape_cast %155 : vector<1x8x64xbf16> to vector<8x64xbf16>
    %157 = vector.shape_cast %154 : vector<8x64xbf16> to vector<1x8x64xbf16>
    tpu.vector_store %arg19[%c3_67, %c0_68, %c0_69], %157 {strides = array<i32>} : memref<8x8x64xbf16, #tpu.memory_space<vmem>>, vector<1x8x64xbf16>,
    %c4 = arith.constant 4 : index
    %c0_70 = arith.constant 0 : index
    %c0_71 = arith.constant 0 : index
    %158 = vector.load %arg17[%c4, %c0_70, %c0_71] : memref<8x8x256xf32, #tpu.memory_space<vmem>>, vector<1x8x256xf32>
    %159 = vector.shape_cast %158 : vector<1x8x256xf32> to vector<8x256xf32>
    %160 = arith.truncf %149 : vector<8x64xf32> to vector<8x64xbf16>
    %cst_72 = arith.constant dense<0.000000e+00> : vector<8x256xf32>
    %161 = tpu.matmul %160, %15, %cst_72 {dimension_numbers = #tpu.dot_dimension_numbers<[1], [0], [0], [1], [0, 0, 1, 1], [], []>} : vector<8x64xbf16>, vector<64x256xbf16>, vector<8x256xf32> -> vector<8x256xf32>
    %162 = arith.addf %159, %161 : vector<8x256xf32>
    %163 = math.tanh %162 : vector<8x256xf32>
    %164 = vector.extract_strided_slice %163 {offsets = [0, 0], sizes = [8, 64], strides = [1, 1]} : vector<8x256xf32> to vector<8x64xf32>
    %cst_73 = arith.constant 5.000000e-01 : f32
    %165 = vector.broadcast %cst_73 : f32 to vector<8x64xf32>
    %166 = arith.mulf %165, %164 : vector<8x64xf32>
    %cst_74 = arith.constant 5.000000e-01 : f32
    %167 = vector.broadcast %cst_74 : f32 to vector<8x64xf32>
    %168 = arith.addf %166, %167 : vector<8x64xf32>
    %169 = vector.extract_strided_slice %163 {offsets = [0, 64], sizes = [8, 64], strides = [1, 1]} : vector<8x256xf32> to vector<8x64xf32>
    %cst_75 = arith.constant 5.000000e-01 : f32
    %170 = vector.broadcast %cst_75 : f32 to vector<8x64xf32>
    %171 = arith.mulf %170, %169 : vector<8x64xf32>
    %cst_76 = arith.constant 5.000000e-01 : f32
    %172 = vector.broadcast %cst_76 : f32 to vector<8x64xf32>
    %173 = arith.addf %171, %172 : vector<8x64xf32>
    %174 = vector.extract_strided_slice %163 {offsets = [0, 128], sizes = [8, 64], strides = [1, 1]} : vector<8x256xf32> to vector<8x64xf32>
    %175 = vector.extract_strided_slice %163 {offsets = [0, 192], sizes = [8, 64], strides = [1, 1]} : vector<8x256xf32> to vector<8x64xf32>
    %cst_77 = arith.constant 5.000000e-01 : f32
    %176 = vector.broadcast %cst_77 : f32 to vector<8x64xf32>
    %177 = arith.mulf %176, %175 : vector<8x64xf32>
    %cst_78 = arith.constant 5.000000e-01 : f32
    %178 = vector.broadcast %cst_78 : f32 to vector<8x64xf32>
    %179 = arith.addf %177, %178 : vector<8x64xf32>
    %180 = arith.mulf %173, %147 : vector<8x64xf32>
    %181 = arith.mulf %168, %174 : vector<8x64xf32>
    %182 = arith.addf %180, %181 : vector<8x64xf32>
    %183 = math.tanh %182 : vector<8x64xf32>
    %184 = arith.mulf %179, %183 : vector<8x64xf32>
    %185 = arith.mulf %184, %11 : vector<8x64xf32>
    %186 = arith.addf %185, %14 : vector<8x64xf32>
    %cst_79 = arith.constant 0.000000e+00 : f32
    %187 = vector.broadcast %cst_79 : f32 to vector<8x64xf32>
    %188 = arith.maximumf %186, %187 : vector<8x64xf32>
    %189 = arith.truncf %188 : vector<8x64xf32> to vector<8x64xbf16>
    %c4_80 = arith.constant 4 : index
    %c0_81 = arith.constant 0 : index
    %c0_82 = arith.constant 0 : index
    %190 = vector.load %arg19[%c4_80, %c0_81, %c0_82] : memref<8x8x64xbf16, #tpu.memory_space<vmem>>, vector<1x8x64xbf16>
    %191 = vector.shape_cast %190 : vector<1x8x64xbf16> to vector<8x64xbf16>
    %192 = vector.shape_cast %189 : vector<8x64xbf16> to vector<1x8x64xbf16>
    tpu.vector_store %arg19[%c4_80, %c0_81, %c0_82], %192 {strides = array<i32>} : memref<8x8x64xbf16, #tpu.memory_space<vmem>>, vector<1x8x64xbf16>,
    %c5 = arith.constant 5 : index
    %c0_83 = arith.constant 0 : index
    %c0_84 = arith.constant 0 : index
    %193 = vector.load %arg17[%c5, %c0_83, %c0_84] : memref<8x8x256xf32, #tpu.memory_space<vmem>>, vector<1x8x256xf32>
    %194 = vector.shape_cast %193 : vector<1x8x256xf32> to vector<8x256xf32>
    %195 = arith.truncf %184 : vector<8x64xf32> to vector<8x64xbf16>
    %cst_85 = arith.constant dense<0.000000e+00> : vector<8x256xf32>
    %196 = tpu.matmul %195, %15, %cst_85 {dimension_numbers = #tpu.dot_dimension_numbers<[1], [0], [0], [1], [0, 0, 1, 1], [], []>} : vector<8x64xbf16>, vector<64x256xbf16>, vector<8x256xf32> -> vector<8x256xf32>
    %197 = arith.addf %194, %196 : vector<8x256xf32>
    %198 = math.tanh %197 : vector<8x256xf32>
    %199 = vector.extract_strided_slice %198 {offsets = [0, 0], sizes = [8, 64], strides = [1, 1]} : vector<8x256xf32> to vector<8x64xf32>
    %cst_86 = arith.constant 5.000000e-01 : f32
    %200 = vector.broadcast %cst_86 : f32 to vector<8x64xf32>
    %201 = arith.mulf %200, %199 : vector<8x64xf32>
    %cst_87 = arith.constant 5.000000e-01 : f32
    %202 = vector.broadcast %cst_87 : f32 to vector<8x64xf32>
    %203 = arith.addf %201, %202 : vector<8x64xf32>
    %204 = vector.extract_strided_slice %198 {offsets = [0, 64], sizes = [8, 64], strides = [1, 1]} : vector<8x256xf32> to vector<8x64xf32>
    %cst_88 = arith.constant 5.000000e-01 : f32
    %205 = vector.broadcast %cst_88 : f32 to vector<8x64xf32>
    %206 = arith.mulf %205, %204 : vector<8x64xf32>
    %cst_89 = arith.constant 5.000000e-01 : f32
    %207 = vector.broadcast %cst_89 : f32 to vector<8x64xf32>
    %208 = arith.addf %206, %207 : vector<8x64xf32>
    %209 = vector.extract_strided_slice %198 {offsets = [0, 128], sizes = [8, 64], strides = [1, 1]} : vector<8x256xf32> to vector<8x64xf32>
    %210 = vector.extract_strided_slice %198 {offsets = [0, 192], sizes = [8, 64], strides = [1, 1]} : vector<8x256xf32> to vector<8x64xf32>
    %cst_90 = arith.constant 5.000000e-01 : f32
    %211 = vector.broadcast %cst_90 : f32 to vector<8x64xf32>
    %212 = arith.mulf %211, %210 : vector<8x64xf32>
    %cst_91 = arith.constant 5.000000e-01 : f32
    %213 = vector.broadcast %cst_91 : f32 to vector<8x64xf32>
    %214 = arith.addf %212, %213 : vector<8x64xf32>
    %215 = arith.mulf %208, %182 : vector<8x64xf32>
    %216 = arith.mulf %203, %209 : vector<8x64xf32>
    %217 = arith.addf %215, %216 : vector<8x64xf32>
    %218 = math.tanh %217 : vector<8x64xf32>
    %219 = arith.mulf %214, %218 : vector<8x64xf32>
    %220 = arith.mulf %219, %11 : vector<8x64xf32>
    %221 = arith.addf %220, %14 : vector<8x64xf32>
    %cst_92 = arith.constant 0.000000e+00 : f32
    %222 = vector.broadcast %cst_92 : f32 to vector<8x64xf32>
    %223 = arith.maximumf %221, %222 : vector<8x64xf32>
    %224 = arith.truncf %223 : vector<8x64xf32> to vector<8x64xbf16>
    %c5_93 = arith.constant 5 : index
    %c0_94 = arith.constant 0 : index
    %c0_95 = arith.constant 0 : index
    %225 = vector.load %arg19[%c5_93, %c0_94, %c0_95] : memref<8x8x64xbf16, #tpu.memory_space<vmem>>, vector<1x8x64xbf16>
    %226 = vector.shape_cast %225 : vector<1x8x64xbf16> to vector<8x64xbf16>
    %227 = vector.shape_cast %224 : vector<8x64xbf16> to vector<1x8x64xbf16>
    tpu.vector_store %arg19[%c5_93, %c0_94, %c0_95], %227 {strides = array<i32>} : memref<8x8x64xbf16, #tpu.memory_space<vmem>>, vector<1x8x64xbf16>,
    %c6 = arith.constant 6 : index
    %c0_96 = arith.constant 0 : index
    %c0_97 = arith.constant 0 : index
    %228 = vector.load %arg17[%c6, %c0_96, %c0_97] : memref<8x8x256xf32, #tpu.memory_space<vmem>>, vector<1x8x256xf32>
    %229 = vector.shape_cast %228 : vector<1x8x256xf32> to vector<8x256xf32>
    %230 = arith.truncf %219 : vector<8x64xf32> to vector<8x64xbf16>
    %cst_98 = arith.constant dense<0.000000e+00> : vector<8x256xf32>
    %231 = tpu.matmul %230, %15, %cst_98 {dimension_numbers = #tpu.dot_dimension_numbers<[1], [0], [0], [1], [0, 0, 1, 1], [], []>} : vector<8x64xbf16>, vector<64x256xbf16>, vector<8x256xf32> -> vector<8x256xf32>
    %232 = arith.addf %229, %231 : vector<8x256xf32>
    %233 = math.tanh %232 : vector<8x256xf32>
    %234 = vector.extract_strided_slice %233 {offsets = [0, 0], sizes = [8, 64], strides = [1, 1]} : vector<8x256xf32> to vector<8x64xf32>
    %cst_99 = arith.constant 5.000000e-01 : f32
    %235 = vector.broadcast %cst_99 : f32 to vector<8x64xf32>
    %236 = arith.mulf %235, %234 : vector<8x64xf32>
    %cst_100 = arith.constant 5.000000e-01 : f32
    %237 = vector.broadcast %cst_100 : f32 to vector<8x64xf32>
    %238 = arith.addf %236, %237 : vector<8x64xf32>
    %239 = vector.extract_strided_slice %233 {offsets = [0, 64], sizes = [8, 64], strides = [1, 1]} : vector<8x256xf32> to vector<8x64xf32>
    %cst_101 = arith.constant 5.000000e-01 : f32
    %240 = vector.broadcast %cst_101 : f32 to vector<8x64xf32>
    %241 = arith.mulf %240, %239 : vector<8x64xf32>
    %cst_102 = arith.constant 5.000000e-01 : f32
    %242 = vector.broadcast %cst_102 : f32 to vector<8x64xf32>
    %243 = arith.addf %241, %242 : vector<8x64xf32>
    %244 = vector.extract_strided_slice %233 {offsets = [0, 128], sizes = [8, 64], strides = [1, 1]} : vector<8x256xf32> to vector<8x64xf32>
    %245 = vector.extract_strided_slice %233 {offsets = [0, 192], sizes = [8, 64], strides = [1, 1]} : vector<8x256xf32> to vector<8x64xf32>
    %cst_103 = arith.constant 5.000000e-01 : f32
    %246 = vector.broadcast %cst_103 : f32 to vector<8x64xf32>
    %247 = arith.mulf %246, %245 : vector<8x64xf32>
    %cst_104 = arith.constant 5.000000e-01 : f32
    %248 = vector.broadcast %cst_104 : f32 to vector<8x64xf32>
    %249 = arith.addf %247, %248 : vector<8x64xf32>
    %250 = arith.mulf %243, %217 : vector<8x64xf32>
    %251 = arith.mulf %238, %244 : vector<8x64xf32>
    %252 = arith.addf %250, %251 : vector<8x64xf32>
    %253 = math.tanh %252 : vector<8x64xf32>
    %254 = arith.mulf %249, %253 : vector<8x64xf32>
    %255 = arith.mulf %254, %11 : vector<8x64xf32>
    %256 = arith.addf %255, %14 : vector<8x64xf32>
    %cst_105 = arith.constant 0.000000e+00 : f32
    %257 = vector.broadcast %cst_105 : f32 to vector<8x64xf32>
    %258 = arith.maximumf %256, %257 : vector<8x64xf32>
    %259 = arith.truncf %258 : vector<8x64xf32> to vector<8x64xbf16>
    %c6_106 = arith.constant 6 : index
    %c0_107 = arith.constant 0 : index
    %c0_108 = arith.constant 0 : index
    %260 = vector.load %arg19[%c6_106, %c0_107, %c0_108] : memref<8x8x64xbf16, #tpu.memory_space<vmem>>, vector<1x8x64xbf16>
    %261 = vector.shape_cast %260 : vector<1x8x64xbf16> to vector<8x64xbf16>
    %262 = vector.shape_cast %259 : vector<8x64xbf16> to vector<1x8x64xbf16>
    tpu.vector_store %arg19[%c6_106, %c0_107, %c0_108], %262 {strides = array<i32>} : memref<8x8x64xbf16, #tpu.memory_space<vmem>>, vector<1x8x64xbf16>,
    %c7 = arith.constant 7 : index
    %c0_109 = arith.constant 0 : index
    %c0_110 = arith.constant 0 : index
    %263 = vector.load %arg17[%c7, %c0_109, %c0_110] : memref<8x8x256xf32, #tpu.memory_space<vmem>>, vector<1x8x256xf32>
    %264 = vector.shape_cast %263 : vector<1x8x256xf32> to vector<8x256xf32>
    %265 = arith.truncf %254 : vector<8x64xf32> to vector<8x64xbf16>
    %cst_111 = arith.constant dense<0.000000e+00> : vector<8x256xf32>
    %266 = tpu.matmul %265, %15, %cst_111 {dimension_numbers = #tpu.dot_dimension_numbers<[1], [0], [0], [1], [0, 0, 1, 1], [], []>} : vector<8x64xbf16>, vector<64x256xbf16>, vector<8x256xf32> -> vector<8x256xf32>
    %267 = arith.addf %264, %266 : vector<8x256xf32>
    %268 = math.tanh %267 : vector<8x256xf32>
    %269 = vector.extract_strided_slice %268 {offsets = [0, 0], sizes = [8, 64], strides = [1, 1]} : vector<8x256xf32> to vector<8x64xf32>
    %cst_112 = arith.constant 5.000000e-01 : f32
    %270 = vector.broadcast %cst_112 : f32 to vector<8x64xf32>
    %271 = arith.mulf %270, %269 : vector<8x64xf32>
    %cst_113 = arith.constant 5.000000e-01 : f32
    %272 = vector.broadcast %cst_113 : f32 to vector<8x64xf32>
    %273 = arith.addf %271, %272 : vector<8x64xf32>
    %274 = vector.extract_strided_slice %268 {offsets = [0, 64], sizes = [8, 64], strides = [1, 1]} : vector<8x256xf32> to vector<8x64xf32>
    %cst_114 = arith.constant 5.000000e-01 : f32
    %275 = vector.broadcast %cst_114 : f32 to vector<8x64xf32>
    %276 = arith.mulf %275, %274 : vector<8x64xf32>
    %cst_115 = arith.constant 5.000000e-01 : f32
    %277 = vector.broadcast %cst_115 : f32 to vector<8x64xf32>
    %278 = arith.addf %276, %277 : vector<8x64xf32>
    %279 = vector.extract_strided_slice %268 {offsets = [0, 128], sizes = [8, 64], strides = [1, 1]} : vector<8x256xf32> to vector<8x64xf32>
    %280 = vector.extract_strided_slice %268 {offsets = [0, 192], sizes = [8, 64], strides = [1, 1]} : vector<8x256xf32> to vector<8x64xf32>
    %cst_116 = arith.constant 5.000000e-01 : f32
    %281 = vector.broadcast %cst_116 : f32 to vector<8x64xf32>
    %282 = arith.mulf %281, %280 : vector<8x64xf32>
    %cst_117 = arith.constant 5.000000e-01 : f32
    %283 = vector.broadcast %cst_117 : f32 to vector<8x64xf32>
    %284 = arith.addf %282, %283 : vector<8x64xf32>
    %285 = arith.mulf %278, %252 : vector<8x64xf32>
    %286 = arith.mulf %273, %279 : vector<8x64xf32>
    %287 = arith.addf %285, %286 : vector<8x64xf32>
    %288 = math.tanh %287 : vector<8x64xf32>
    %289 = arith.mulf %284, %288 : vector<8x64xf32>
    %290 = arith.mulf %289, %11 : vector<8x64xf32>
    %291 = arith.addf %290, %14 : vector<8x64xf32>
    %cst_118 = arith.constant 0.000000e+00 : f32
    %292 = vector.broadcast %cst_118 : f32 to vector<8x64xf32>
    %293 = arith.maximumf %291, %292 : vector<8x64xf32>
    %294 = arith.truncf %293 : vector<8x64xf32> to vector<8x64xbf16>
    %c7_119 = arith.constant 7 : index
    %c0_120 = arith.constant 0 : index
    %c0_121 = arith.constant 0 : index
    %295 = vector.load %arg19[%c7_119, %c0_120, %c0_121] : memref<8x8x64xbf16, #tpu.memory_space<vmem>>, vector<1x8x64xbf16>
    %296 = vector.shape_cast %295 : vector<1x8x64xbf16> to vector<8x64xbf16>
    %297 = vector.shape_cast %294 : vector<8x64xbf16> to vector<1x8x64xbf16>
    tpu.vector_store %arg19[%c7_119, %c0_120, %c0_121], %297 {strides = array<i32>} : memref<8x8x64xbf16, #tpu.memory_space<vmem>>, vector<1x8x64xbf16>,
    %c0_122 = arith.constant 0 : index
    %c0_123 = arith.constant 0 : index
    %c0_124 = arith.constant 0 : index
    %298 = vector.load %arg19[%c0_122, %c0_123, %c0_124] : memref<8x8x64xbf16, #tpu.memory_space<vmem>>, vector<8x8x64xbf16>
    %299 = vector.shape_cast %298 : vector<8x8x64xbf16> to vector<64x64xbf16>
    %c0_125 = arith.constant 0 : index
    %c0_126 = arith.constant 0 : index
    %300 = vector.load %arg7[%c0_125, %c0_126] : memref<64x128xbf16, #tpu.memory_space<vmem>>, vector<64x128xbf16>
    %cst_127 = arith.constant dense<0.000000e+00> : vector<64x128xf32>
    %301 = tpu.matmul %299, %300, %cst_127 {dimension_numbers = #tpu.dot_dimension_numbers<[1], [0], [0], [1], [0, 0, 1, 1], [], []>} : vector<64x64xbf16>, vector<64x128xbf16>, vector<64x128xf32> -> vector<64x128xf32>
    %c0_128 = arith.constant 0 : index
    %c0_129 = arith.constant 0 : index
    %302 = vector.load %arg9[%c0_128, %c0_129] : memref<1x128xf32, #tpu.memory_space<vmem>>, vector<1x128xf32>
    %303 = vector.broadcast %302 : vector<1x128xf32> to vector<64x128xf32>
    %304 = arith.addf %301, %303 : vector<64x128xf32>
    %305 = vector.shape_cast %304 : vector<64x128xf32> to vector<8x8x128xf32>
    %c0_130 = arith.constant 0 : index
    %c0_131 = arith.constant 0 : index
    %c0_132 = arith.constant 0 : index
    %306 = vector.load %arg18[%c0_130, %c0_131, %c0_132] : memref<8x8x128xf32, #tpu.memory_space<vmem>>, vector<8x8x128xf32>
    tpu.vector_store %arg18[%c0_130, %c0_131, %c0_132], %305 {strides = array<i32>} : memref<8x8x128xf32, #tpu.memory_space<vmem>>, vector<8x8x128xf32>,
    %c0_133 = arith.constant 0 : index
    %c0_134 = arith.constant 0 : index
    %307 = vector.load %arg8[%c0_133, %c0_134] : memref<32x128xbf16, #tpu.memory_space<vmem>>, vector<32x128xbf16>
    %cst_135 = arith.constant 0.000000e+00 : f32
    %308 = vector.broadcast %cst_135 : f32 to vector<8x32xf32>
    %cst_136 = arith.constant 0.000000e+00 : f32
    %309 = vector.broadcast %cst_136 : f32 to vector<8x32xf32>
    %c0_137 = arith.constant 0 : index
    %c0_138 = arith.constant 0 : index
    %c0_139 = arith.constant 0 : index
    %310 = vector.load %arg18[%c0_137, %c0_138, %c0_139] : memref<8x8x128xf32, #tpu.memory_space<vmem>>, vector<1x8x128xf32>
    %311 = vector.shape_cast %310 : vector<1x8x128xf32> to vector<8x128xf32>
    %312 = arith.truncf %308 : vector<8x32xf32> to vector<8x32xbf16>
    %cst_140 = arith.constant dense<0.000000e+00> : vector<8x128xf32>
    %313 = tpu.matmul %312, %307, %cst_140 {dimension_numbers = #tpu.dot_dimension_numbers<[1], [0], [0], [1], [0, 0, 1, 1], [], []>} : vector<8x32xbf16>, vector<32x128xbf16>, vector<8x128xf32> -> vector<8x128xf32>
    %314 = arith.addf %311, %313 : vector<8x128xf32>
    %315 = math.tanh %314 : vector<8x128xf32>
    %316 = vector.extract_strided_slice %315 {offsets = [0, 0], sizes = [8, 32], strides = [1, 1]} : vector<8x128xf32> to vector<8x32xf32>
    %cst_141 = arith.constant 5.000000e-01 : f32
    %317 = vector.broadcast %cst_141 : f32 to vector<8x32xf32>
    %318 = arith.mulf %317, %316 : vector<8x32xf32>
    %cst_142 = arith.constant 5.000000e-01 : f32
    %319 = vector.broadcast %cst_142 : f32 to vector<8x32xf32>
    %320 = arith.addf %318, %319 : vector<8x32xf32>
    %321 = vector.extract_strided_slice %315 {offsets = [0, 32], sizes = [8, 32], strides = [1, 1]} : vector<8x128xf32> to vector<8x32xf32>
    %cst_143 = arith.constant 5.000000e-01 : f32
    %322 = vector.broadcast %cst_143 : f32 to vector<8x32xf32>
    %323 = arith.mulf %322, %321 : vector<8x32xf32>
    %cst_144 = arith.constant 5.000000e-01 : f32
    %324 = vector.broadcast %cst_144 : f32 to vector<8x32xf32>
    %325 = arith.addf %323, %324 : vector<8x32xf32>
    %326 = vector.extract_strided_slice %315 {offsets = [0, 64], sizes = [8, 32], strides = [1, 1]} : vector<8x128xf32> to vector<8x32xf32>
    %327 = vector.extract_strided_slice %315 {offsets = [0, 96], sizes = [8, 32], strides = [1, 1]} : vector<8x128xf32> to vector<8x32xf32>
    %cst_145 = arith.constant 5.000000e-01 : f32
    %328 = vector.broadcast %cst_145 : f32 to vector<8x32xf32>
    %329 = arith.mulf %328, %327 : vector<8x32xf32>
    %cst_146 = arith.constant 5.000000e-01 : f32
    %330 = vector.broadcast %cst_146 : f32 to vector<8x32xf32>
    %331 = arith.addf %329, %330 : vector<8x32xf32>
    %332 = arith.mulf %325, %309 : vector<8x32xf32>
    %333 = arith.mulf %320, %326 : vector<8x32xf32>
    %334 = arith.addf %332, %333 : vector<8x32xf32>
    %335 = math.tanh %334 : vector<8x32xf32>
    %336 = arith.mulf %331, %335 : vector<8x32xf32>
    %c1_147 = arith.constant 1 : index
    %c0_148 = arith.constant 0 : index
    %c0_149 = arith.constant 0 : index
    %337 = vector.load %arg18[%c1_147, %c0_148, %c0_149] : memref<8x8x128xf32, #tpu.memory_space<vmem>>, vector<1x8x128xf32>
    %338 = vector.shape_cast %337 : vector<1x8x128xf32> to vector<8x128xf32>
    %339 = arith.truncf %336 : vector<8x32xf32> to vector<8x32xbf16>
    %cst_150 = arith.constant dense<0.000000e+00> : vector<8x128xf32>
    %340 = tpu.matmul %339, %307, %cst_150 {dimension_numbers = #tpu.dot_dimension_numbers<[1], [0], [0], [1], [0, 0, 1, 1], [], []>} : vector<8x32xbf16>, vector<32x128xbf16>, vector<8x128xf32> -> vector<8x128xf32>
    %341 = arith.addf %338, %340 : vector<8x128xf32>
    %342 = math.tanh %341 : vector<8x128xf32>
    %343 = vector.extract_strided_slice %342 {offsets = [0, 0], sizes = [8, 32], strides = [1, 1]} : vector<8x128xf32> to vector<8x32xf32>
    %cst_151 = arith.constant 5.000000e-01 : f32
    %344 = vector.broadcast %cst_151 : f32 to vector<8x32xf32>
    %345 = arith.mulf %344, %343 : vector<8x32xf32>
    %cst_152 = arith.constant 5.000000e-01 : f32
    %346 = vector.broadcast %cst_152 : f32 to vector<8x32xf32>
    %347 = arith.addf %345, %346 : vector<8x32xf32>
    %348 = vector.extract_strided_slice %342 {offsets = [0, 32], sizes = [8, 32], strides = [1, 1]} : vector<8x128xf32> to vector<8x32xf32>
    %cst_153 = arith.constant 5.000000e-01 : f32
    %349 = vector.broadcast %cst_153 : f32 to vector<8x32xf32>
    %350 = arith.mulf %349, %348 : vector<8x32xf32>
    %cst_154 = arith.constant 5.000000e-01 : f32
    %351 = vector.broadcast %cst_154 : f32 to vector<8x32xf32>
    %352 = arith.addf %350, %351 : vector<8x32xf32>
    %353 = vector.extract_strided_slice %342 {offsets = [0, 64], sizes = [8, 32], strides = [1, 1]} : vector<8x128xf32> to vector<8x32xf32>
    %354 = vector.extract_strided_slice %342 {offsets = [0, 96], sizes = [8, 32], strides = [1, 1]} : vector<8x128xf32> to vector<8x32xf32>
    %cst_155 = arith.constant 5.000000e-01 : f32
    %355 = vector.broadcast %cst_155 : f32 to vector<8x32xf32>
    %356 = arith.mulf %355, %354 : vector<8x32xf32>
    %cst_156 = arith.constant 5.000000e-01 : f32
    %357 = vector.broadcast %cst_156 : f32 to vector<8x32xf32>
    %358 = arith.addf %356, %357 : vector<8x32xf32>
    %359 = arith.mulf %352, %334 : vector<8x32xf32>
    %360 = arith.mulf %347, %353 : vector<8x32xf32>
    %361 = arith.addf %359, %360 : vector<8x32xf32>
    %362 = math.tanh %361 : vector<8x32xf32>
    %363 = arith.mulf %358, %362 : vector<8x32xf32>
    %c2_157 = arith.constant 2 : index
    %c0_158 = arith.constant 0 : index
    %c0_159 = arith.constant 0 : index
    %364 = vector.load %arg18[%c2_157, %c0_158, %c0_159] : memref<8x8x128xf32, #tpu.memory_space<vmem>>, vector<1x8x128xf32>
    %365 = vector.shape_cast %364 : vector<1x8x128xf32> to vector<8x128xf32>
    %366 = arith.truncf %363 : vector<8x32xf32> to vector<8x32xbf16>
    %cst_160 = arith.constant dense<0.000000e+00> : vector<8x128xf32>
    %367 = tpu.matmul %366, %307, %cst_160 {dimension_numbers = #tpu.dot_dimension_numbers<[1], [0], [0], [1], [0, 0, 1, 1], [], []>} : vector<8x32xbf16>, vector<32x128xbf16>, vector<8x128xf32> -> vector<8x128xf32>
    %368 = arith.addf %365, %367 : vector<8x128xf32>
    %369 = math.tanh %368 : vector<8x128xf32>
    %370 = vector.extract_strided_slice %369 {offsets = [0, 0], sizes = [8, 32], strides = [1, 1]} : vector<8x128xf32> to vector<8x32xf32>
    %cst_161 = arith.constant 5.000000e-01 : f32
    %371 = vector.broadcast %cst_161 : f32 to vector<8x32xf32>
    %372 = arith.mulf %371, %370 : vector<8x32xf32>
    %cst_162 = arith.constant 5.000000e-01 : f32
    %373 = vector.broadcast %cst_162 : f32 to vector<8x32xf32>
    %374 = arith.addf %372, %373 : vector<8x32xf32>
    %375 = vector.extract_strided_slice %369 {offsets = [0, 32], sizes = [8, 32], strides = [1, 1]} : vector<8x128xf32> to vector<8x32xf32>
    %cst_163 = arith.constant 5.000000e-01 : f32
    %376 = vector.broadcast %cst_163 : f32 to vector<8x32xf32>
    %377 = arith.mulf %376, %375 : vector<8x32xf32>
    %cst_164 = arith.constant 5.000000e-01 : f32
    %378 = vector.broadcast %cst_164 : f32 to vector<8x32xf32>
    %379 = arith.addf %377, %378 : vector<8x32xf32>
    %380 = vector.extract_strided_slice %369 {offsets = [0, 64], sizes = [8, 32], strides = [1, 1]} : vector<8x128xf32> to vector<8x32xf32>
    %381 = vector.extract_strided_slice %369 {offsets = [0, 96], sizes = [8, 32], strides = [1, 1]} : vector<8x128xf32> to vector<8x32xf32>
    %cst_165 = arith.constant 5.000000e-01 : f32
    %382 = vector.broadcast %cst_165 : f32 to vector<8x32xf32>
    %383 = arith.mulf %382, %381 : vector<8x32xf32>
    %cst_166 = arith.constant 5.000000e-01 : f32
    %384 = vector.broadcast %cst_166 : f32 to vector<8x32xf32>
    %385 = arith.addf %383, %384 : vector<8x32xf32>
    %386 = arith.mulf %379, %361 : vector<8x32xf32>
    %387 = arith.mulf %374, %380 : vector<8x32xf32>
    %388 = arith.addf %386, %387 : vector<8x32xf32>
    %389 = math.tanh %388 : vector<8x32xf32>
    %390 = arith.mulf %385, %389 : vector<8x32xf32>
    %c3_167 = arith.constant 3 : index
    %c0_168 = arith.constant 0 : index
    %c0_169 = arith.constant 0 : index
    %391 = vector.load %arg18[%c3_167, %c0_168, %c0_169] : memref<8x8x128xf32, #tpu.memory_space<vmem>>, vector<1x8x128xf32>
    %392 = vector.shape_cast %391 : vector<1x8x128xf32> to vector<8x128xf32>
    %393 = arith.truncf %390 : vector<8x32xf32> to vector<8x32xbf16>
    %cst_170 = arith.constant dense<0.000000e+00> : vector<8x128xf32>
    %394 = tpu.matmul %393, %307, %cst_170 {dimension_numbers = #tpu.dot_dimension_numbers<[1], [0], [0], [1], [0, 0, 1, 1], [], []>} : vector<8x32xbf16>, vector<32x128xbf16>, vector<8x128xf32> -> vector<8x128xf32>
    %395 = arith.addf %392, %394 : vector<8x128xf32>
    %396 = math.tanh %395 : vector<8x128xf32>
    %397 = vector.extract_strided_slice %396 {offsets = [0, 0], sizes = [8, 32], strides = [1, 1]} : vector<8x128xf32> to vector<8x32xf32>
    %cst_171 = arith.constant 5.000000e-01 : f32
    %398 = vector.broadcast %cst_171 : f32 to vector<8x32xf32>
    %399 = arith.mulf %398, %397 : vector<8x32xf32>
    %cst_172 = arith.constant 5.000000e-01 : f32
    %400 = vector.broadcast %cst_172 : f32 to vector<8x32xf32>
    %401 = arith.addf %399, %400 : vector<8x32xf32>
    %402 = vector.extract_strided_slice %396 {offsets = [0, 32], sizes = [8, 32], strides = [1, 1]} : vector<8x128xf32> to vector<8x32xf32>
    %cst_173 = arith.constant 5.000000e-01 : f32
    %403 = vector.broadcast %cst_173 : f32 to vector<8x32xf32>
    %404 = arith.mulf %403, %402 : vector<8x32xf32>
    %cst_174 = arith.constant 5.000000e-01 : f32
    %405 = vector.broadcast %cst_174 : f32 to vector<8x32xf32>
    %406 = arith.addf %404, %405 : vector<8x32xf32>
    %407 = vector.extract_strided_slice %396 {offsets = [0, 64], sizes = [8, 32], strides = [1, 1]} : vector<8x128xf32> to vector<8x32xf32>
    %408 = vector.extract_strided_slice %396 {offsets = [0, 96], sizes = [8, 32], strides = [1, 1]} : vector<8x128xf32> to vector<8x32xf32>
    %cst_175 = arith.constant 5.000000e-01 : f32
    %409 = vector.broadcast %cst_175 : f32 to vector<8x32xf32>
    %410 = arith.mulf %409, %408 : vector<8x32xf32>
    %cst_176 = arith.constant 5.000000e-01 : f32
    %411 = vector.broadcast %cst_176 : f32 to vector<8x32xf32>
    %412 = arith.addf %410, %411 : vector<8x32xf32>
    %413 = arith.mulf %406, %388 : vector<8x32xf32>
    %414 = arith.mulf %401, %407 : vector<8x32xf32>
    %415 = arith.addf %413, %414 : vector<8x32xf32>
    %416 = math.tanh %415 : vector<8x32xf32>
    %417 = arith.mulf %412, %416 : vector<8x32xf32>
    %c4_177 = arith.constant 4 : index
    %c0_178 = arith.constant 0 : index
    %c0_179 = arith.constant 0 : index
    %418 = vector.load %arg18[%c4_177, %c0_178, %c0_179] : memref<8x8x128xf32, #tpu.memory_space<vmem>>, vector<1x8x128xf32>
    %419 = vector.shape_cast %418 : vector<1x8x128xf32> to vector<8x128xf32>
    %420 = arith.truncf %417 : vector<8x32xf32> to vector<8x32xbf16>
    %cst_180 = arith.constant dense<0.000000e+00> : vector<8x128xf32>
    %421 = tpu.matmul %420, %307, %cst_180 {dimension_numbers = #tpu.dot_dimension_numbers<[1], [0], [0], [1], [0, 0, 1, 1], [], []>} : vector<8x32xbf16>, vector<32x128xbf16>, vector<8x128xf32> -> vector<8x128xf32>
    %422 = arith.addf %419, %421 : vector<8x128xf32>
    %423 = math.tanh %422 : vector<8x128xf32>
    %424 = vector.extract_strided_slice %423 {offsets = [0, 0], sizes = [8, 32], strides = [1, 1]} : vector<8x128xf32> to vector<8x32xf32>
    %cst_181 = arith.constant 5.000000e-01 : f32
    %425 = vector.broadcast %cst_181 : f32 to vector<8x32xf32>
    %426 = arith.mulf %425, %424 : vector<8x32xf32>
    %cst_182 = arith.constant 5.000000e-01 : f32
    %427 = vector.broadcast %cst_182 : f32 to vector<8x32xf32>
    %428 = arith.addf %426, %427 : vector<8x32xf32>
    %429 = vector.extract_strided_slice %423 {offsets = [0, 32], sizes = [8, 32], strides = [1, 1]} : vector<8x128xf32> to vector<8x32xf32>
    %cst_183 = arith.constant 5.000000e-01 : f32
    %430 = vector.broadcast %cst_183 : f32 to vector<8x32xf32>
    %431 = arith.mulf %430, %429 : vector<8x32xf32>
    %cst_184 = arith.constant 5.000000e-01 : f32
    %432 = vector.broadcast %cst_184 : f32 to vector<8x32xf32>
    %433 = arith.addf %431, %432 : vector<8x32xf32>
    %434 = vector.extract_strided_slice %423 {offsets = [0, 64], sizes = [8, 32], strides = [1, 1]} : vector<8x128xf32> to vector<8x32xf32>
    %435 = vector.extract_strided_slice %423 {offsets = [0, 96], sizes = [8, 32], strides = [1, 1]} : vector<8x128xf32> to vector<8x32xf32>
    %cst_185 = arith.constant 5.000000e-01 : f32
    %436 = vector.broadcast %cst_185 : f32 to vector<8x32xf32>
    %437 = arith.mulf %436, %435 : vector<8x32xf32>
    %cst_186 = arith.constant 5.000000e-01 : f32
    %438 = vector.broadcast %cst_186 : f32 to vector<8x32xf32>
    %439 = arith.addf %437, %438 : vector<8x32xf32>
    %440 = arith.mulf %433, %415 : vector<8x32xf32>
    %441 = arith.mulf %428, %434 : vector<8x32xf32>
    %442 = arith.addf %440, %441 : vector<8x32xf32>
    %443 = math.tanh %442 : vector<8x32xf32>
    %444 = arith.mulf %439, %443 : vector<8x32xf32>
    %c5_187 = arith.constant 5 : index
    %c0_188 = arith.constant 0 : index
    %c0_189 = arith.constant 0 : index
    %445 = vector.load %arg18[%c5_187, %c0_188, %c0_189] : memref<8x8x128xf32, #tpu.memory_space<vmem>>, vector<1x8x128xf32>
    %446 = vector.shape_cast %445 : vector<1x8x128xf32> to vector<8x128xf32>
    %447 = arith.truncf %444 : vector<8x32xf32> to vector<8x32xbf16>
    %cst_190 = arith.constant dense<0.000000e+00> : vector<8x128xf32>
    %448 = tpu.matmul %447, %307, %cst_190 {dimension_numbers = #tpu.dot_dimension_numbers<[1], [0], [0], [1], [0, 0, 1, 1], [], []>} : vector<8x32xbf16>, vector<32x128xbf16>, vector<8x128xf32> -> vector<8x128xf32>
    %449 = arith.addf %446, %448 : vector<8x128xf32>
    %450 = math.tanh %449 : vector<8x128xf32>
    %451 = vector.extract_strided_slice %450 {offsets = [0, 0], sizes = [8, 32], strides = [1, 1]} : vector<8x128xf32> to vector<8x32xf32>
    %cst_191 = arith.constant 5.000000e-01 : f32
    %452 = vector.broadcast %cst_191 : f32 to vector<8x32xf32>
    %453 = arith.mulf %452, %451 : vector<8x32xf32>
    %cst_192 = arith.constant 5.000000e-01 : f32
    %454 = vector.broadcast %cst_192 : f32 to vector<8x32xf32>
    %455 = arith.addf %453, %454 : vector<8x32xf32>
    %456 = vector.extract_strided_slice %450 {offsets = [0, 32], sizes = [8, 32], strides = [1, 1]} : vector<8x128xf32> to vector<8x32xf32>
    %cst_193 = arith.constant 5.000000e-01 : f32
    %457 = vector.broadcast %cst_193 : f32 to vector<8x32xf32>
    %458 = arith.mulf %457, %456 : vector<8x32xf32>
    %cst_194 = arith.constant 5.000000e-01 : f32
    %459 = vector.broadcast %cst_194 : f32 to vector<8x32xf32>
    %460 = arith.addf %458, %459 : vector<8x32xf32>
    %461 = vector.extract_strided_slice %450 {offsets = [0, 64], sizes = [8, 32], strides = [1, 1]} : vector<8x128xf32> to vector<8x32xf32>
    %462 = vector.extract_strided_slice %450 {offsets = [0, 96], sizes = [8, 32], strides = [1, 1]} : vector<8x128xf32> to vector<8x32xf32>
    %cst_195 = arith.constant 5.000000e-01 : f32
    %463 = vector.broadcast %cst_195 : f32 to vector<8x32xf32>
    %464 = arith.mulf %463, %462 : vector<8x32xf32>
    %cst_196 = arith.constant 5.000000e-01 : f32
    %465 = vector.broadcast %cst_196 : f32 to vector<8x32xf32>
    %466 = arith.addf %464, %465 : vector<8x32xf32>
    %467 = arith.mulf %460, %442 : vector<8x32xf32>
    %468 = arith.mulf %455, %461 : vector<8x32xf32>
    %469 = arith.addf %467, %468 : vector<8x32xf32>
    %470 = math.tanh %469 : vector<8x32xf32>
    %471 = arith.mulf %466, %470 : vector<8x32xf32>
    %c6_197 = arith.constant 6 : index
    %c0_198 = arith.constant 0 : index
    %c0_199 = arith.constant 0 : index
    %472 = vector.load %arg18[%c6_197, %c0_198, %c0_199] : memref<8x8x128xf32, #tpu.memory_space<vmem>>, vector<1x8x128xf32>
    %473 = vector.shape_cast %472 : vector<1x8x128xf32> to vector<8x128xf32>
    %474 = arith.truncf %471 : vector<8x32xf32> to vector<8x32xbf16>
    %cst_200 = arith.constant dense<0.000000e+00> : vector<8x128xf32>
    %475 = tpu.matmul %474, %307, %cst_200 {dimension_numbers = #tpu.dot_dimension_numbers<[1], [0], [0], [1], [0, 0, 1, 1], [], []>} : vector<8x32xbf16>, vector<32x128xbf16>, vector<8x128xf32> -> vector<8x128xf32>
    %476 = arith.addf %473, %475 : vector<8x128xf32>
    %477 = math.tanh %476 : vector<8x128xf32>
    %478 = vector.extract_strided_slice %477 {offsets = [0, 0], sizes = [8, 32], strides = [1, 1]} : vector<8x128xf32> to vector<8x32xf32>
    %cst_201 = arith.constant 5.000000e-01 : f32
    %479 = vector.broadcast %cst_201 : f32 to vector<8x32xf32>
    %480 = arith.mulf %479, %478 : vector<8x32xf32>
    %cst_202 = arith.constant 5.000000e-01 : f32
    %481 = vector.broadcast %cst_202 : f32 to vector<8x32xf32>
    %482 = arith.addf %480, %481 : vector<8x32xf32>
    %483 = vector.extract_strided_slice %477 {offsets = [0, 32], sizes = [8, 32], strides = [1, 1]} : vector<8x128xf32> to vector<8x32xf32>
    %cst_203 = arith.constant 5.000000e-01 : f32
    %484 = vector.broadcast %cst_203 : f32 to vector<8x32xf32>
    %485 = arith.mulf %484, %483 : vector<8x32xf32>
    %cst_204 = arith.constant 5.000000e-01 : f32
    %486 = vector.broadcast %cst_204 : f32 to vector<8x32xf32>
    %487 = arith.addf %485, %486 : vector<8x32xf32>
    %488 = vector.extract_strided_slice %477 {offsets = [0, 64], sizes = [8, 32], strides = [1, 1]} : vector<8x128xf32> to vector<8x32xf32>
    %489 = vector.extract_strided_slice %477 {offsets = [0, 96], sizes = [8, 32], strides = [1, 1]} : vector<8x128xf32> to vector<8x32xf32>
    %cst_205 = arith.constant 5.000000e-01 : f32
    %490 = vector.broadcast %cst_205 : f32 to vector<8x32xf32>
    %491 = arith.mulf %490, %489 : vector<8x32xf32>
    %cst_206 = arith.constant 5.000000e-01 : f32
    %492 = vector.broadcast %cst_206 : f32 to vector<8x32xf32>
    %493 = arith.addf %491, %492 : vector<8x32xf32>
    %494 = arith.mulf %487, %469 : vector<8x32xf32>
    %495 = arith.mulf %482, %488 : vector<8x32xf32>
    %496 = arith.addf %494, %495 : vector<8x32xf32>
    %497 = math.tanh %496 : vector<8x32xf32>
    %498 = arith.mulf %493, %497 : vector<8x32xf32>
    %c7_207 = arith.constant 7 : index
    %c0_208 = arith.constant 0 : index
    %c0_209 = arith.constant 0 : index
    %499 = vector.load %arg18[%c7_207, %c0_208, %c0_209] : memref<8x8x128xf32, #tpu.memory_space<vmem>>, vector<1x8x128xf32>
    %500 = vector.shape_cast %499 : vector<1x8x128xf32> to vector<8x128xf32>
    %501 = arith.truncf %498 : vector<8x32xf32> to vector<8x32xbf16>
    %cst_210 = arith.constant dense<0.000000e+00> : vector<8x128xf32>
    %502 = tpu.matmul %501, %307, %cst_210 {dimension_numbers = #tpu.dot_dimension_numbers<[1], [0], [0], [1], [0, 0, 1, 1], [], []>} : vector<8x32xbf16>, vector<32x128xbf16>, vector<8x128xf32> -> vector<8x128xf32>
    %503 = arith.addf %500, %502 : vector<8x128xf32>
    %504 = math.tanh %503 : vector<8x128xf32>
    %505 = vector.extract_strided_slice %504 {offsets = [0, 0], sizes = [8, 32], strides = [1, 1]} : vector<8x128xf32> to vector<8x32xf32>
    %cst_211 = arith.constant 5.000000e-01 : f32
    %506 = vector.broadcast %cst_211 : f32 to vector<8x32xf32>
    %507 = arith.mulf %506, %505 : vector<8x32xf32>
    %cst_212 = arith.constant 5.000000e-01 : f32
    %508 = vector.broadcast %cst_212 : f32 to vector<8x32xf32>
    %509 = arith.addf %507, %508 : vector<8x32xf32>
    %510 = vector.extract_strided_slice %504 {offsets = [0, 32], sizes = [8, 32], strides = [1, 1]} : vector<8x128xf32> to vector<8x32xf32>
    %cst_213 = arith.constant 5.000000e-01 : f32
    %511 = vector.broadcast %cst_213 : f32 to vector<8x32xf32>
    %512 = arith.mulf %511, %510 : vector<8x32xf32>
    %cst_214 = arith.constant 5.000000e-01 : f32
    %513 = vector.broadcast %cst_214 : f32 to vector<8x32xf32>
    %514 = arith.addf %512, %513 : vector<8x32xf32>
    %515 = vector.extract_strided_slice %504 {offsets = [0, 64], sizes = [8, 32], strides = [1, 1]} : vector<8x128xf32> to vector<8x32xf32>
    %516 = vector.extract_strided_slice %504 {offsets = [0, 96], sizes = [8, 32], strides = [1, 1]} : vector<8x128xf32> to vector<8x32xf32>
    %cst_215 = arith.constant 5.000000e-01 : f32
    %517 = vector.broadcast %cst_215 : f32 to vector<8x32xf32>
    %518 = arith.mulf %517, %516 : vector<8x32xf32>
    %cst_216 = arith.constant 5.000000e-01 : f32
    %519 = vector.broadcast %cst_216 : f32 to vector<8x32xf32>
    %520 = arith.addf %518, %519 : vector<8x32xf32>
    %521 = arith.mulf %514, %496 : vector<8x32xf32>
    %522 = arith.mulf %509, %515 : vector<8x32xf32>
    %523 = arith.addf %521, %522 : vector<8x32xf32>
    %524 = math.tanh %523 : vector<8x32xf32>
    %525 = arith.mulf %520, %524 : vector<8x32xf32>
    %526 = arith.truncf %525 : vector<8x32xf32> to vector<8x32xbf16>
    %c0_217 = arith.constant 0 : index
    %c0_218 = arith.constant 0 : index
    %527 = vector.load %arg10[%c0_217, %c0_218] : memref<32x64xbf16, #tpu.memory_space<vmem>>, vector<32x64xbf16>
    %cst_219 = arith.constant dense<0.000000e+00> : vector<8x64xf32>
    %528 = tpu.matmul %526, %527, %cst_219 {dimension_numbers = #tpu.dot_dimension_numbers<[1], [0], [0], [1], [0, 0, 1, 1], [], []>} : vector<8x32xbf16>, vector<32x64xbf16>, vector<8x64xf32> -> vector<8x64xf32>
    %c0_220 = arith.constant 0 : index
    %c0_221 = arith.constant 0 : index
    %529 = vector.load %arg11[%c0_220, %c0_221] : memref<1x64xf32, #tpu.memory_space<vmem>>, vector<1x64xf32>
    %530 = vector.broadcast %529 : vector<1x64xf32> to vector<8x64xf32>
    %531 = arith.addf %528, %530 : vector<8x64xf32>
    %cst_222 = arith.constant 0.000000e+00 : f32
    %532 = vector.broadcast %cst_222 : f32 to vector<8x64xf32>
    %533 = arith.maximumf %531, %532 : vector<8x64xf32>
    %534 = arith.truncf %533 : vector<8x64xf32> to vector<8x64xbf16>
    %c0_223 = arith.constant 0 : index
    %c0_224 = arith.constant 0 : index
    %535 = vector.load %arg12[%c0_223, %c0_224] : memref<64x32xbf16, #tpu.memory_space<vmem>>, vector<64x32xbf16>
    %cst_225 = arith.constant dense<0.000000e+00> : vector<8x32xf32>
    %536 = tpu.matmul %534, %535, %cst_225 {dimension_numbers = #tpu.dot_dimension_numbers<[1], [0], [0], [1], [0, 0, 1, 1], [], []>} : vector<8x64xbf16>, vector<64x32xbf16>, vector<8x32xf32> -> vector<8x32xf32>
    %c0_226 = arith.constant 0 : index
    %c0_227 = arith.constant 0 : index
    %537 = vector.load %arg13[%c0_226, %c0_227] : memref<1x32xf32, #tpu.memory_space<vmem>>, vector<1x32xf32>
    %538 = vector.broadcast %537 : vector<1x32xf32> to vector<8x32xf32>
    %539 = arith.addf %536, %538 : vector<8x32xf32>
    %cst_228 = arith.constant 0.000000e+00 : f32
    %540 = vector.broadcast %cst_228 : f32 to vector<8x32xf32>
    %541 = arith.maximumf %539, %540 : vector<8x32xf32>
    %c0_229 = arith.constant 0 : index
    %c0_230 = arith.constant 0 : index
    %542 = vector.load %arg14[%c0_229, %c0_230] : memref<1x32xf32, #tpu.memory_space<vmem>>, vector<1x32xf32>
    %543 = vector.broadcast %542 : vector<1x32xf32> to vector<8x32xf32>
    %544 = arith.mulf %541, %543 : vector<8x32xf32>
    %cst_231 = arith.constant dense<0.000000e+00> : vector<8xf32>
    %545 = vector.multi_reduction <add>, %544, %cst_231 [1] : vector<8x32xf32> to vector<8xf32>
    %546 = vector.shape_cast %545 : vector<8xf32> to vector<8x1xf32>
    %c0_232 = arith.constant 0 : index
    %c0_233 = arith.constant 0 : index
    %547 = vector.load %arg15[%c0_232, %c0_233] : memref<1x1xf32, #tpu.memory_space<vmem>>, vector<1x1xf32>
    %548 = vector.broadcast %547 : vector<1x1xf32> to vector<8x1xf32>
    %549 = arith.addf %546, %548 : vector<8x1xf32>
    %550 = arith.negf %549 : vector<8x1xf32>
    %551 = math.exp %550 : vector<8x1xf32>
    %cst_234 = arith.constant 1.000000e+00 : f32
    %552 = vector.broadcast %cst_234 : f32 to vector<8x1xf32>
    %553 = arith.addf %552, %551 : vector<8x1xf32>
    %554 = arith.divf %552, %553 : vector<8x1xf32>
    %c0_235 = arith.constant 0 : index
    %c0_236 = arith.constant 0 : index
    %555 = vector.load %arg16[%c0_235, %c0_236] : memref<8x1xf32, #tpu.memory_space<vmem>>, vector<8x1xf32>
    tpu.vector_store %arg16[%c0_235, %c0_236], %554 {strides = array<i32>} : memref<8x1xf32, #tpu.memory_space<vmem>>, vector<8x1xf32>,
    return
  }
  func.func @transform_0(%arg0: i32) -> (i32, i32, i32) {
    %c0_i32 = arith.constant 0 : i32
    %c0_i32_0 = arith.constant 0 : i32
    %c0_i32_1 = arith.constant 0 : i32
    return %c0_i32, %arg0, %c0_i32_0 : i32, i32, i32
  }
  func.func @transform_1(%arg0: i32) -> (i32, i32) {
    %c0_i32 = arith.constant 0 : i32
    %c0_i32_0 = arith.constant 0 : i32
    %c0_i32_1 = arith.constant 0 : i32
    return %c0_i32, %c0_i32_0 : i32, i32
  }
  func.func @transform_2(%arg0: i32) -> (i32, i32) {
    %c0_i32 = arith.constant 0 : i32
    %c0_i32_0 = arith.constant 0 : i32
    %c0_i32_1 = arith.constant 0 : i32
    return %c0_i32, %c0_i32_0 : i32, i32
  }
  func.func @transform_3(%arg0: i32) -> (i32, i32) {
    %c0_i32 = arith.constant 0 : i32
    %c0_i32_0 = arith.constant 0 : i32
    %c0_i32_1 = arith.constant 0 : i32
    return %c0_i32, %c0_i32_0 : i32, i32
  }
  func.func @transform_4(%arg0: i32) -> (i32, i32) {
    %c0_i32 = arith.constant 0 : i32
    %c0_i32_0 = arith.constant 0 : i32
    %c0_i32_1 = arith.constant 0 : i32
    return %c0_i32, %c0_i32_0 : i32, i32
  }
  func.func @transform_5(%arg0: i32) -> (i32, i32) {
    %c0_i32 = arith.constant 0 : i32
    %c0_i32_0 = arith.constant 0 : i32
    %c0_i32_1 = arith.constant 0 : i32
    return %c0_i32, %c0_i32_0 : i32, i32
  }
  func.func @transform_6(%arg0: i32) -> (i32, i32) {
    %c0_i32 = arith.constant 0 : i32
    %c0_i32_0 = arith.constant 0 : i32
    %c0_i32_1 = arith.constant 0 : i32
    return %c0_i32, %c0_i32_0 : i32, i32
  }
  func.func @transform_7(%arg0: i32) -> (i32, i32) {
    %c0_i32 = arith.constant 0 : i32
    %c0_i32_0 = arith.constant 0 : i32
    %c0_i32_1 = arith.constant 0 : i32
    return %c0_i32, %c0_i32_0 : i32, i32
  }
  func.func @transform_8(%arg0: i32) -> (i32, i32) {
    %c0_i32 = arith.constant 0 : i32
    %c0_i32_0 = arith.constant 0 : i32
    %c0_i32_1 = arith.constant 0 : i32
    return %c0_i32, %c0_i32_0 : i32, i32
  }
  func.func @transform_9(%arg0: i32) -> (i32, i32) {
    %c0_i32 = arith.constant 0 : i32
    %c0_i32_0 = arith.constant 0 : i32
    %c0_i32_1 = arith.constant 0 : i32
    return %c0_i32, %c0_i32_0 : i32, i32
  }
  func.func @transform_10(%arg0: i32) -> (i32, i32) {
    %c0_i32 = arith.constant 0 : i32
    %c0_i32_0 = arith.constant 0 : i32
    %c0_i32_1 = arith.constant 0 : i32
    return %c0_i32, %c0_i32_0 : i32, i32
  }
  func.func @transform_11(%arg0: i32) -> (i32, i32) {
    %c0_i32 = arith.constant 0 : i32
    %c0_i32_0 = arith.constant 0 : i32
    %c0_i32_1 = arith.constant 0 : i32
    return %c0_i32, %c0_i32_0 : i32, i32
  }
  func.func @transform_12(%arg0: i32) -> (i32, i32) {
    %c0_i32 = arith.constant 0 : i32
    %c0_i32_0 = arith.constant 0 : i32
    %c0_i32_1 = arith.constant 0 : i32
    return %c0_i32, %c0_i32_0 : i32, i32
  }
  func.func @transform_13(%arg0: i32) -> (i32, i32) {
    %c0_i32 = arith.constant 0 : i32
    %c0_i32_0 = arith.constant 0 : i32
    %c0_i32_1 = arith.constant 0 : i32
    return %c0_i32, %c0_i32_0 : i32, i32
  }
  func.func @transform_14(%arg0: i32) -> (i32, i32) {
    %c0_i32 = arith.constant 0 : i32
    %c0_i32_0 = arith.constant 0 : i32
    %c0_i32_1 = arith.constant 0 : i32
    return %c0_i32, %c0_i32_0 : i32, i32
  }
  func.func @transform_15(%arg0: i32) -> (i32, i32) {
    %c0_i32 = arith.constant 0 : i32
    %c0_i32_0 = arith.constant 0 : i32
    return %arg0, %c0_i32 : i32, i32
  }
}

</mosaic_0001>

<bundles_post_ra>
// kernel: mul.42
= control target key start
LH: loop header
LB: loop body
LE: loop exit
PB: predicated region body
PF: predicated region fallthrough
CT: control target
= control target key end

     0   :  { %s34_s0 = inlined_call_operand.vmem [shape: f32[256], index: 0, kind: input, shape index: {}]   ;;  %s35_s1 = inlined_call_operand.vmem [shape: f32[256], index: 1, kind: input, shape index: {}]   ;;  %s36_s2 = inlined_call_operand.vmem [shape: f32[256], index: 2, kind: output, shape index: {}]  }
   0x1   :  { %v3_v0 = vld [vmem:[%s34_s0] sm:$0x3] }
   0x2   :  { %v4_v1 = vld [vmem:[%s35_s1] sm:$0x3] }
   0x3   :  { %v7_v2 = vmul.f32 %v4_v1, %v3_v0 }
   0x5   :  { %9 = vst [vmem:[%s36_s2] sm:$0x3] %v7_v2 }

// kernel: forward.1
= control target key start
LH: loop header
LB: loop body
LE: loop exit
PB: predicated region body
PF: predicated region fallthrough
CT: control target
= control target key end

     0   :  { %vm124_vm0 = vcmask 1042432   ;;  %vm125_vm1 = vcmask 1043456   ;;  %v2181_v1 = vmov 65535   ;;  %v2182_v3 = vmov 0   ;;  %s2752_s2 = inlined_call_operand.vmem [shape: bf16[64,256], index: 2, kind: input, shape index: {}]   ;;  %s2753_s1 = inlined_call_operand.vmem [shape: bf16[23,256], index: 1, kind: input, shape index: {}]   ;;  %s2754_s0 = inlined_call_operand.vmem [shape: bf16[8,8,23], index: 0, kind: input, shape index: {}]   ;;  %s2755_s3 = inlined_call_operand.vmem [shape: f32[1,256], index: 3, kind: input, shape index: {}]   ;;  %s2756_s4 = inlined_call_operand.vmem [shape: f32[1,64], index: 4, kind: input, shape index: {}]   ;;  %s2757_s5 = inlined_call_operand.vmem [shape: f32[1,64], index: 5, kind: input, shape index: {}]   ;;  %s2758_s6 = inlined_call_operand.vmem [shape: bf16[64,128], index: 6, kind: input, shape index: {}]   ;;  %s2759_s7 = inlined_call_operand.vmem [shape: bf16[32,128], index: 7, kind: input, shape index: {}]   ;;  %s2760_s8 = inlined_call_operand.vmem [shape: f32[1,128], index: 8, kind: input, shape index: {}]   ;;  %s2761_s9 = inlined_call_operand.vmem [shape: bf16[32,64], index: 9, kind: input, shape index: {}]   ;;  %s2762_s11 = inlined_call_operand.vmem [shape: bf16[64,32], index: 11, kind: input, shape index: {}]   ;;  %s2763_s10 = inlined_call_operand.vmem [shape: f32[1,64], index: 10, kind: input, shape index: {}]   ;;  %s2764_s14 = inlined_call_operand.<no memory space> [shape: f32[1,1], index: 14, kind: input, shape index: {}]   ;;  %s2765_s12 = inlined_call_operand.vmem [shape: f32[1,32], index: 12, kind: input, shape index: {}]   ;;  %s2766_s13 = inlined_call_operand.vmem [shape: f32[1,32], index: 13, kind: input, shape index: {}]   ;;  %s2767_s15 = inlined_call_operand.vmem [shape: f32[8,1], index: 15, kind: output, shape index: {}]  }
   0x1   :  { %v2270_v0 = vld [vmem:[%s2752_s2 + $0x4] ss:$8 sps:$4 sm:$0xff]   ;;  %v126_v2 = vsel %vm124_vm0, 4294967295, %v2181_v1  ;;  %166 = vmatprep.mubr.bf16.mxu0 %v2182_v3  ;;  %321 = vmatprep.mubr.bf16.mxu1 %v2182_v3  ;;  %v2277_v4 = vld [vmem:[%s2752_s2] ss:$8 sps:$4 sm:$0xff]   ;;  %v63_v5 = vld [vmem:[%s2753_s1 + $0x10] sm:$0xff]  ;;  %v66_v20 = vlaneseq }
   0x2   :  { %289 = vmatprep.subr.bf16.mxu1 %v2270_v0  ;;  %v2063_v6 = vld [vmem:[%s2753_s1 + $0x4] ss:$8 sps:$4 sm:$0xff]   ;;  %v2065_v7 = vld [vmem:[%s2753_s1] ss:$8 sps:$4 sm:$0xff]   ;;  %v127_v8 = vsel %vm125_vm1, %v126_v2, 0  ;;  %v1841_v10 = vcombine.high %v63_v5, %v63_v5  ;;  %v1840_v11 = vcombine.low %v63_v5, %v63_v5  ;;  %vm111_vm2 = vcmask 187392  }
   0x3   :  { %290 = vmatpush1.bf16.msra.mxu1 %v2277_v4  ;;  %v2293_v9 = vld [vmem:[%s2752_s2 + $0x14] ss:$8 sps:$4 sm:$0xff]   ;;  %134 = vmatprep.subr.bf16.mxu0 %v2063_v6  ;;  %v2298_v12 = vld [vmem:[%s2752_s2 + $0x10] ss:$8 sps:$4 sm:$0xff]   ;;  %v2304_v15 = vld [vmem:[%s2752_s2 + $0x24] ss:$8 sps:$4 sm:$0xff]  }
   0x4   :  { %135 = vmatpush1.bf16.msra.mxu0 %v2065_v7  ;;  %291 = vmatprep.subr.bf16.mxu1 %v2293_v9  ;;  %v132_v13 = vand.u32 %v1841_v10, %v127_v8  ;;  %v129_v14 = vand.u32 %v1840_v11, %v127_v8  ;;  %v2310_v16 = vld [vmem:[%s2752_s2 + $0x20] ss:$8 sps:$4 sm:$0xff]   ;;  %v2319_v18 = vld [vmem:[%s2752_s2 + $0x34] ss:$8 sps:$4 sm:$0xff]   ;;  %v2326_v19 = vld [vmem:[%s2752_s2 + $0x30] ss:$8 sps:$4 sm:$0xff]  }
   0x5   :  { %v2074_v17 = vld [vmem:[%s2754_s0] sm:$0xff]   ;;  %v67_v21 = vshrl.u32 %v66_v20, 7  ;;  %vm285_vm3 = vcmask 523264   ;;  %v2078_v5 = vld [vmem:[%s2754_s0 + $0x8] sm:$0xff]   ;;  %v2079_v6 = vld [vmem:[%s2754_s0 + $0x10] sm:$0xff]   ;;  %vm363_vm4 = vcmask 519168  }
   0x6   :  { %136 = vmatprep.subr.bf16.mxu0 %v132_v13  ;;  %v64_v23 = vld [vmem:[%s2755_s3] sm:$0x3]  ;;  %s2183_s3 = smov 64   ;;  %v2080_v7 = vld [vmem:[%s2754_s0 + $0x18] sm:$0xff]   ;;  %vm2185_vm5 = vmmov 0   ;;  %vm1094_vm6 = vcmask 261120  }
   0x7   :  { %292 = vmatpush1.bf16.msra.mxu1 %v2298_v12  ;;  %v68_v22 = vsub.s32 0, %v67_v21  ;;  %v72_v24 = vsub.s32 1, %v67_v21  ;;  %vm1828_vm7 = vcmask 7168  }
   0x8   :  { %293 = vmatprep.subr.bf16.mxu1 %v2304_v15  ;;  %137 = vmatpush1.bf16.msra.mxu0 %v129_v14 }
   0x9   :  { %455 = vmatprep.subr.bf16.mxu0 %v2270_v0  ;;  %v2354_v25 = vrot.slane %v64_v23, %v68_v22  ;;  %v2356_v27 = vrot.slane %v64_v23, %v72_v24 }
   0xb   :  { %294 = vmatpush1.bf16.msra.mxu1 %v2310_v16  ;;  %1842 = vmatmul.mubr.msk.bf16.vlgmr.msra.gmra.mrb[0].mxu0 %vm111_vm2, %v2074_v17 }
   0xc   :  { %295 = vmatprep.subr.bf16.mxu1 %v2319_v18  ;;  %456 = vmatpush1.bf16.msra.mxu0 %v2277_v4 }
   0xd   :  { %176 = vmatprep.mubr.bf16.mxu0 %v2182_v3  ;;  %457 = vmatprep.subr.bf16.mxu0 %v2293_v9 }
   0xf   :  { %296 = vmatpush1.bf16.msra.mxu1 %v2326_v19 }
  0x10   :  { %375 = vmatprep.subr.bf16.mxu1 %v2270_v0  ;;  %458 = vmatpush1.bf16.msra.mxu0 %v2298_v12 }
  0x11   :  { %459 = vmatprep.subr.bf16.mxu0 %v2304_v15 }
  0x12   :  { %322 = vmatmul.mubr.bf16.vlgmr.msra.gmra.mrb[0].mxu1 %v2182_v3 }
  0x13   :  { %376 = vmatpush1.bf16.msra.mxu1 %v2277_v4  ;;  %407 = vmatprep.mubr.bf16.mxu1 %v2182_v3 }
  0x14   :  { %377 = vmatprep.subr.bf16.mxu1 %v2293_v9  ;;  %460 = vmatpush1.bf16.msra.mxu0 %v2310_v16 }
  0x15   :  { %461 = vmatprep.subr.bf16.mxu0 %v2319_v18  ;;  %1843 = vmatmul.mubr.msk.bf16.gmra.mrb[4].mxu0 %vm111_vm2, %v2078_v5 }
  0x16   :  { %186 = vmatprep.mubr.bf16.mxu0 %v2182_v3 }
  0x17   :  { %378 = vmatpush1.bf16.msra.mxu1 %v2298_v12 }
  0x18   :  { %379 = vmatprep.subr.bf16.mxu1 %v2304_v15  ;;  %462 = vmatpush1.bf16.msra.mxu0 %v2326_v19 }
  0x19   :  { %615 = vmatprep.subr.bf16.mxu0 %v2270_v0 }
  0x1b   :  { %380 = vmatpush1.bf16.msra.mxu1 %v2310_v16 }
  0x1c   :  { %381 = vmatprep.subr.bf16.mxu1 %v2319_v18 }
  0x1d   :  { %1844 = vmatmul.mubr.msk.bf16.gmra.mrb[8].mxu0 %vm111_vm2, %v2079_v6 }
  0x1e   :  { %196 = vmatprep.mubr.bf16.mxu0 %v2182_v3 }
  0x1f   :  { %382 = vmatpush1.bf16.msra.mxu1 %v2326_v19 }
  0x20   :  { %535 = vmatprep.subr.bf16.mxu1 %v2270_v0 }
  0x25   :  { %1845 = vmatmul.mubr.msk.bf16.gmra.mrb[12].mxu0 %vm111_vm2, %v2080_v7 }
  0x26   :  { %487 = vmatprep.mubr.bf16.mxu0 %v2182_v3 }
  0xde   :  { %v168_v26 = vpop.f32.mrb[0].mxu0 }
  0xdf   :  { %v170_v28 = vpop.f32.mrb[1].mxu0  ;;  %v169_v30 = vadd.f32 %v168_v26, %v2354_v25 }
  0xe0   :  { %v172_v29 = vpop.f32.mrb[2].mxu0  ;;  %v171_v32 = vadd.f32 %v170_v28, %v2356_v27 }
  0xe1   :  { %v174_v31 = vpop.f32.mrb[3].mxu0  ;;  %v173_v53 = vadd.f32 %v172_v29, %v2354_v25 }
  0xe2   :  { %v175_v54 = vadd.f32 %v174_v31, %v2356_v27 }
  0xe5   :  { %v323_v33 = vpop.f32.mrb[0].mxu1 }
  0xe6   :  { %v330_v34 = vadd.f32 %v323_v33, %v169_v30  ;;  %v325_v35 = vpop.f32.mrb[1].mxu1 }
  0xe7   :  { %v331_v36 = vadd.f32 %v325_v35, %v171_v32  ;;  %v327_v37 = vpop.f32.mrb[2].mxu1 }
  0xe8   :  { %2097 = vtanh.f32 %v330_v34  ;;  %v328_v38 = vpop.f32.mrb[3].mxu1  ;;  %v178_v22 = vpop.f32.mrb[4].mxu0 }
  0xe9   :  { %2099 = vtanh.f32 %v331_v36  ;;  %v180_v23 = vpop.f32.mrb[5].mxu0  ;;  %v179_v37 = vadd.f32 %v178_v22, %v2354_v25 }
  0xea   :  { %v182_v24 = vpop.f32.mrb[6].mxu0  ;;  %v181_v38 = vadd.f32 %v180_v23, %v2356_v27 }
  0xeb   :  { %v184_v26 = vpop.f32.mrb[7].mxu0 }
  0xf0   :  { %v2399_v28 = vpop.f32.mrb[8].mxu0 }
  0xf1   :  { %v2401_v29 = vpop.f32.mrb[9].mxu0 }
  0xf2   :  { %v2098_v39 = vpop.eup %2097  ;;  %v2403_v30 = vpop.f32.mrb[10].mxu0 }
  0xf3   :  { %v334_v40 = vmul.f32 0.5, %v2098_v39  ;;  %v2100_v42 = vpop.eup %2099  ;;  %v2405_v31 = vpop.f32.mrb[11].mxu0 }
  0xf4   :  { %v336_v47 = vmul.f32 0.5, %v2100_v42 }
  0xf5   :  { %v335_v41 = vadd.f32 0.5, %v334_v40 }
  0xf6   :  { %v337_v48 = vadd.f32 0.5, %v336_v47 }
  0xf7   :  { %v339_v43 = vmul.f32 %v2100_v42, %v335_v41  ;;  %v338_v44 = vmul.f32 0.0, %v335_v41 }
  0xf8   :  { %v2407_v32 = vpop.f32.mrb[12].mxu0 }
  0xf9   :  { %341 = vrot.lane.b32.xlu0 %v339_v43, %s2183_s3  ;;  %v2409_v33 = vpop.f32.mrb[13].mxu0 }
  0xfa   :  { %v2411_v34 = vpop.f32.mrb[14].mxu0 }
  0xfb   :  { %v2413_v35 = vpop.f32.mrb[15].mxu0 }
 0x16b   :  { %v342_v45 = vpop.permute.xlu0 %341 }
 0x16c   :  { %v344_v46 = vadd.f32 %v342_v45, %v338_v44 }
 0x16e   :  { %2101 = vtanh.f32 %v344_v46 }
 0x178   :  { %v2102_v49 = vpop.eup %2101 }
 0x179   :  { %v2361_v50 = vmul.f32 %v2102_v49, %v337_v48 }
 0x17b   :  { %v368_v51 = vpack.c.bf16 %v2361_v50, %v2361_v50 }
 0x17d   :  { %370 = vrot.lane.b32.xlu0 %v368_v51, %s2183_s3 }
 0x1ef   :  { %v371_v52 = vpop.permute.xlu0 %370 }
 0x1f0   :  { %1857 = vmatmul.mubr.msk.bf16.vlgmr.msra.gmra.mrb[4].mxu1 %vm285_vm3, %v371_v52 }
 0x1f1   :  { %536 = vmatpush1.bf16.msra.mxu1 %v2277_v4  ;;  %567 = vmatprep.mubr.bf16.mxu1 %v2182_v3 }
 0x1f2   :  { %537 = vmatprep.subr.bf16.mxu1 %v2293_v9 }
 0x1f5   :  { %538 = vmatpush1.bf16.msra.mxu1 %v2298_v12 }
 0x1f6   :  { %539 = vmatprep.subr.bf16.mxu1 %v2304_v15 }
 0x1f9   :  { %540 = vmatpush1.bf16.msra.mxu1 %v2310_v16 }
 0x1fa   :  { %541 = vmatprep.subr.bf16.mxu1 %v2319_v18 }
 0x1fd   :  { %542 = vmatpush1.bf16.msra.mxu1 %v2326_v19 }
 0x1fe   :  { %695 = vmatprep.subr.bf16.mxu1 %v2270_v0 }
 0x2c3   :  { %v409_v55 = vpop.f32.mrb[4].mxu1 }
 0x2c4   :  { %v416_v56 = vadd.f32 %v409_v55, %v173_v53  ;;  %v411_v57 = vpop.f32.mrb[5].mxu1 }
 0x2c5   :  { %v417_v58 = vadd.f32 %v411_v57, %v175_v54  ;;  %v413_v59 = vpop.f32.mrb[6].mxu1 }
 0x2c6   :  { %2103 = vtanh.f32 %v416_v56  ;;  %v414_v60 = vpop.f32.mrb[7].mxu1 }
 0x2c7   :  { %2105 = vtanh.f32 %v417_v58  ;;  %v183_v60 = vadd.f32 %v182_v24, %v2354_v25 }
 0x2d0   :  { %v2104_v61 = vpop.eup %2103 }
 0x2d1   :  { %v420_v62 = vmul.f32 0.5, %v2104_v61  ;;  %v2106_v1 = vpop.eup %2105  ;;  %v185_v61 = vadd.f32 %v184_v26, %v2356_v27 }
 0x2d2   :  { %v422_v13 = vmul.f32 0.5, %v2106_v1 }
 0x2d3   :  { %v421_v63 = vadd.f32 0.5, %v420_v62 }
 0x2d4   :  { %v423_v14 = vadd.f32 0.5, %v422_v13 }
 0x2d5   :  { %v425_v2 = vmul.f32 %v2106_v1, %v421_v63  ;;  %v424_v8 = vmul.f32 %v421_v63, %v344_v46 }
 0x2d7   :  { %427 = vrot.lane.b32.xlu1 %v425_v2, %s2183_s3 }
 0x349   :  { %v428_v10 = vpop.permute.xlu1 %427 }
 0x34a   :  { %v430_v11 = vadd.f32 %v428_v10, %v424_v8 }
 0x34c   :  { %2107 = vtanh.f32 %v430_v11 }
 0x356   :  { %v2108_v17 = vpop.eup %2107 }
 0x357   :  { %v2394_v20 = vmul.f32 %v2108_v17, %v423_v14 }
 0x359   :  { %v448_v21 = vpack.c.bf16 %v2394_v20, %v2394_v20 }
 0x35b   :  { %450 = vrot.lane.b32.xlu1 %v448_v21, %s2183_s3 }
 0x3cd   :  { %v451_v36 = vpop.permute.xlu1 %450 }
 0x3ce   :  { %1859 = vmatmul.mubr.msk.bf16.vlgmr.msra.gmra.mrb[16].mxu0 %vm285_vm3, %v451_v36 }
 0x3cf   :  { %616 = vmatpush1.bf16.msra.mxu0 %v2277_v4  ;;  %647 = vmatprep.mubr.bf16.mxu0 %v2182_v3 }
 0x3d0   :  { %617 = vmatprep.subr.bf16.mxu0 %v2293_v9 }
 0x3d3   :  { %618 = vmatpush1.bf16.msra.mxu0 %v2298_v12 }
 0x3d4   :  { %619 = vmatprep.subr.bf16.mxu0 %v2304_v15 }
 0x3d7   :  { %620 = vmatpush1.bf16.msra.mxu0 %v2310_v16 }
 0x3d8   :  { %621 = vmatprep.subr.bf16.mxu0 %v2319_v18 }
 0x3db   :  { %622 = vmatpush1.bf16.msra.mxu0 %v2326_v19 }
 0x3dc   :  { %775 = vmatprep.subr.bf16.mxu0 %v2270_v0 }
 0x4a1   :  { %v489_v39 = vpop.f32.mrb[16].mxu0 }
 0x4a2   :  { %v496_v40 = vadd.f32 %v489_v39, %v179_v37  ;;  %v491_v41 = vpop.f32.mrb[17].mxu0  ;;  %v189_v37 = vadd.f32 %v2399_v28, %v2354_v25 }
 0x4a3   :  { %v497_v42 = vadd.f32 %v491_v41, %v181_v38  ;;  %v493_v43 = vpop.f32.mrb[18].mxu0  ;;  %v191_v38 = vadd.f32 %v2401_v29, %v2356_v27 }
 0x4a4   :  { %2109 = vtanh.f32 %v496_v40  ;;  %v494_v44 = vpop.f32.mrb[19].mxu0 }
 0x4a5   :  { %2111 = vtanh.f32 %v497_v42 }
 0x4ae   :  { %v2110_v45 = vpop.eup %2109 }
 0x4af   :  { %v500_v46 = vmul.f32 0.5, %v2110_v45  ;;  %v2112_v48 = vpop.eup %2111 }
 0x4b0   :  { %v502_v54 = vmul.f32 0.5, %v2112_v48 }
 0x4b1   :  { %v501_v47 = vadd.f32 0.5, %v500_v46 }
 0x4b2   :  { %v503_v55 = vadd.f32 0.5, %v502_v54 }
 0x4b3   :  { %v505_v49 = vmul.f32 %v2112_v48, %v501_v47  ;;  %v504_v51 = vmul.f32 %v501_v47, %v430_v11 }
 0x4b5   :  { %507 = vrot.lane.b32.xlu0 %v505_v49, %s2183_s3 }
 0x527   :  { %v508_v52 = vpop.permute.xlu0 %507 }
 0x528   :  { %v510_v53 = vadd.f32 %v508_v52, %v504_v51 }
 0x52a   :  { %2113 = vtanh.f32 %v510_v53 }
 0x534   :  { %v2114_v56 = vpop.eup %2113 }
 0x535   :  { %v2428_v57 = vmul.f32 %v2114_v56, %v503_v55 }
 0x537   :  { %v528_v58 = vpack.c.bf16 %v2428_v57, %v2428_v57 }
 0x539   :  { %530 = vrot.lane.b32.xlu1 %v528_v58, %s2183_s3 }
 0x5ab   :  { %v531_v59 = vpop.permute.xlu1 %530 }
 0x5ac   :  { %1861 = vmatmul.mubr.msk.bf16.vlgmr.msra.gmra.mrb[8].mxu1 %vm285_vm3, %v531_v59  ;;  %v193_v59 = vadd.f32 %v2403_v30, %v2354_v25 }
 0x5ad   :  { %696 = vmatpush1.bf16.msra.mxu1 %v2277_v4  ;;  %727 = vmatprep.mubr.bf16.mxu1 %v2182_v3 }
 0x5ae   :  { %697 = vmatprep.subr.bf16.mxu1 %v2293_v9 }
 0x5b1   :  { %698 = vmatpush1.bf16.msra.mxu1 %v2298_v12 }
 0x5b2   :  { %699 = vmatprep.subr.bf16.mxu1 %v2304_v15 }
 0x5b5   :  { %700 = vmatpush1.bf16.msra.mxu1 %v2310_v16 }
 0x5b6   :  { %701 = vmatprep.subr.bf16.mxu1 %v2319_v18 }
 0x5b9   :  { %702 = vmatpush1.bf16.msra.mxu1 %v2326_v19 }
 0x5ba   :  { %855 = vmatprep.subr.bf16.mxu1 %v2270_v0 }
 0x67f   :  { %v569_v62 = vpop.f32.mrb[8].mxu1 }
 0x680   :  { %v576_v63 = vadd.f32 %v569_v62, %v183_v60  ;;  %v571_v1 = vpop.f32.mrb[9].mxu1 }
 0x681   :  { %v577_v2 = vadd.f32 %v571_v1, %v185_v61  ;;  %v573_v5 = vpop.f32.mrb[10].mxu1 }
 0x682   :  { %2115 = vtanh.f32 %v576_v63  ;;  %v574_v6 = vpop.f32.mrb[11].mxu1 }
 0x683   :  { %2117 = vtanh.f32 %v577_v2 }
 0x68c   :  { %v2116_v7 = vpop.eup %2115 }
 0x68d   :  { %v580_v8 = vmul.f32 0.5, %v2116_v7  ;;  %v2118_v11 = vpop.eup %2117 }
 0x68e   :  { %v582_v21 = vmul.f32 0.5, %v2118_v11 }
 0x68f   :  { %v581_v10 = vadd.f32 0.5, %v580_v8 }
 0x690   :  { %v583_v22 = vadd.f32 0.5, %v582_v21 }
 0x691   :  { %v585_v13 = vmul.f32 %v2118_v11, %v581_v10  ;;  %v584_v0 = vmul.f32 %v581_v10, %v510_v53  ;;  %v1846_v11 = vld [vmem:[%s2756_s4] ss:$0 sm:$0xff] }
 0x693   :  { %587 = vrot.lane.b32.xlu0 %v585_v13, %s2183_s3 }
 0x705   :  { %v588_v14 = vpop.permute.xlu0 %587 }
 0x706   :  { %v590_v17 = vadd.f32 %v588_v14, %v584_v0  ;;  %v199_v0 = vadd.f32 %v2407_v32, %v2354_v25  ;;  %v201_v14 = vadd.f32 %v2409_v33, %v2356_v27  ;;  %v1847_v32 = vld [vmem:[%s2757_s5] ss:$0 sm:$0xff] }
 0x707   :  { %v2081_v33 = vld [vmem:[%s2758_s6] sm:$0xff]  }
 0x708   :  { %2119 = vtanh.f32 %v590_v17 }
 0x712   :  { %v2120_v23 = vpop.eup %2119 }
 0x713   :  { %v2446_v24 = vmul.f32 %v2120_v23, %v583_v22 }
 0x715   :  { %v608_v26 = vpack.c.bf16 %v2446_v24, %v2446_v24 }
 0x717   :  { %610 = vrot.lane.b32.xlu1 %v608_v26, %s2183_s3 }
 0x789   :  { %v611_v36 = vpop.permute.xlu1 %610 }
 0x78a   :  { %1863 = vmatmul.mubr.msk.bf16.vlgmr.msra.gmra.mrb[20].mxu0 %vm285_vm3, %v611_v36 }
 0x78b   :  { %776 = vmatpush1.bf16.msra.mxu0 %v2277_v4  ;;  %807 = vmatprep.mubr.bf16.mxu0 %v2182_v3 }
 0x78c   :  { %777 = vmatprep.subr.bf16.mxu0 %v2293_v9 }
 0x78f   :  { %778 = vmatpush1.bf16.msra.mxu0 %v2298_v12 }
 0x790   :  { %779 = vmatprep.subr.bf16.mxu0 %v2304_v15 }
 0x793   :  { %780 = vmatpush1.bf16.msra.mxu0 %v2310_v16 }
 0x794   :  { %781 = vmatprep.subr.bf16.mxu0 %v2319_v18 }
 0x797   :  { %782 = vmatpush1.bf16.msra.mxu0 %v2326_v19 }
 0x798   :  { %1954 = vmatprep.subr.bf16.mxu0 %v2081_v33 }
 0x85d   :  { %v649_v39 = vpop.f32.mrb[20].mxu0 }
 0x85e   :  { %v656_v40 = vadd.f32 %v649_v39, %v189_v37  ;;  %v651_v41 = vpop.f32.mrb[21].mxu0 }
 0x85f   :  { %v657_v42 = vadd.f32 %v651_v41, %v191_v38  ;;  %v653_v43 = vpop.f32.mrb[22].mxu0 }
 0x860   :  { %2121 = vtanh.f32 %v656_v40  ;;  %v654_v44 = vpop.f32.mrb[23].mxu0 }
 0x861   :  { %2123 = vtanh.f32 %v657_v42  ;;  %v2082_v42 = vld [vmem:[%s2758_s6 + $0x8] sm:$0xff]  }
 0x86a   :  { %v2122_v45 = vpop.eup %2121 }
 0x86b   :  { %v660_v46 = vmul.f32 0.5, %v2122_v45  ;;  %v2124_v48 = vpop.eup %2123 }
 0x86c   :  { %v662_v29 = vmul.f32 0.5, %v2124_v48 }
 0x86d   :  { %v661_v47 = vadd.f32 0.5, %v660_v46 }
 0x86e   :  { %v663_v53 = vadd.f32 0.5, %v662_v29 }
 0x86f   :  { %v665_v49 = vmul.f32 %v2124_v48, %v661_v47  ;;  %v664_v51 = vmul.f32 %v661_v47, %v590_v17  ;;  %v2083_v47 = vld [vmem:[%s2758_s6 + $0x10] sm:$0xff]  }
 0x871   :  { %667 = vrot.lane.b32.xlu0 %v665_v49, %s2183_s3 }
 0x8e3   :  { %v668_v28 = vpop.permute.xlu0 %667 }
 0x8e4   :  { %v670_v52 = vadd.f32 %v668_v28, %v664_v51 }
 0x8e6   :  { %2125 = vtanh.f32 %v670_v52 }
 0x8f0   :  { %v2126_v54 = vpop.eup %2125 }
 0x8f1   :  { %v2465_v55 = vmul.f32 %v2126_v54, %v663_v53 }
 0x8f3   :  { %v688_v56 = vpack.c.bf16 %v2465_v55, %v2465_v55 }
 0x8f5   :  { %690 = vrot.lane.b32.xlu1 %v688_v56, %s2183_s3 }
 0x967   :  { %v691_v58 = vpop.permute.xlu1 %690 }
 0x968   :  { %1865 = vmatmul.mubr.msk.bf16.vlgmr.msra.gmra.mrb[12].mxu1 %vm285_vm3, %v691_v58  ;;  %v2184_v58 = vmov 0.0  }
 0x969   :  { %856 = vmatpush1.bf16.msra.mxu1 %v2277_v4  ;;  %887 = vmatprep.mubr.bf16.mxu1 %v2182_v3  ;;  %v195_v4 = vadd.f32 %v2405_v31, %v2356_v27 }
 0x96a   :  { %857 = vmatprep.subr.bf16.mxu1 %v2293_v9 }
 0x96d   :  { %858 = vmatpush1.bf16.msra.mxu1 %v2298_v12 }
 0x96e   :  { %859 = vmatprep.subr.bf16.mxu1 %v2304_v15 }
 0x971   :  { %860 = vmatpush1.bf16.msra.mxu1 %v2310_v16 }
 0x972   :  { %861 = vmatprep.subr.bf16.mxu1 %v2319_v18 }
 0x975   :  { %862 = vmatpush1.bf16.msra.mxu1 %v2326_v19 }
 0x976   :  { %1970 = vmatprep.subr.bf16.mxu1 %v2184_v58 }
 0xa3b   :  { %v729_v60 = vpop.f32.mrb[12].mxu1 }
 0xa3c   :  { %v736_v61 = vadd.f32 %v729_v60, %v193_v59  ;;  %v731_v62 = vpop.f32.mrb[13].mxu1 }
 0xa3d   :  { %v737_v9 = vadd.f32 %v731_v62, %v195_v4  ;;  %v733_v63 = vpop.f32.mrb[14].mxu1 }
 0xa3e   :  { %2127 = vtanh.f32 %v736_v61  ;;  %v734_v12 = vpop.f32.mrb[15].mxu1 }
 0xa3f   :  { %2129 = vtanh.f32 %v737_v9 }
 0xa48   :  { %v2128_v15 = vpop.eup %2127 }
 0xa49   :  { %v740_v16 = vmul.f32 0.5, %v2128_v15  ;;  %v2130_v18 = vpop.eup %2129 }
 0xa4a   :  { %v742_v31 = vmul.f32 0.5, %v2130_v18 }
 0xa4b   :  { %v741_v1 = vadd.f32 0.5, %v740_v16 }
 0xa4c   :  { %v743_v6 = vadd.f32 0.5, %v742_v31 }
 0xa4d   :  { %v745_v2 = vmul.f32 %v2130_v18, %v741_v1  ;;  %v744_v19 = vmul.f32 %v741_v1, %v670_v52 }
 0xa4f   :  { %747 = vrot.lane.b32.xlu0 %v745_v2, %s2183_s3 }
 0xac1   :  { %v748_v30 = vpop.permute.xlu0 %747 }
 0xac2   :  { %v750_v5 = vadd.f32 %v748_v30, %v744_v19  ;;  %v2552_v30 = vld [vmem:[%s2759_s7] sm:$0xff]  }
 0xac4   :  { %2131 = vtanh.f32 %v750_v5 }
 0xace   :  { %v2132_v7 = vpop.eup %2131 }
 0xacf   :  { %v2484_v8 = vmul.f32 %v2132_v7, %v743_v6  ;;  %v2560_v6 = vld [vmem:[%s2759_s7 + $0x8] sm:$0xff]  }
 0xad1   :  { %v768_v10 = vpack.c.bf16 %v2484_v8, %v2484_v8 }
 0xad3   :  { %770 = vrot.lane.b32.xlu1 %v768_v10, %s2183_s3  ;;  %v203_v10 = vadd.f32 %v2411_v34, %v2354_v25 }
 0xad7   :  { %347 = vrot.lane.b32.xlu1 %v1846_v11, %s2183_s3 }
 0xb45   :  { %v771_v13 = vpop.permute.xlu1 %770 }
 0xb46   :  { %1867 = vmatmul.mubr.msk.bf16.vlgmr.msra.gmra.mrb[24].mxu0 %vm285_vm3, %v771_v13 }
 0xb47   :  { %1955 = vmatpush3.bf16.msra.mxu0 %v2081_v33 }
 0xb48   :  { %1956 = vmatprep.subr.bf16.mxu0 %v2082_v42 }
 0xb49   :  { %v2509_v43 = vpop.permute.xlu1 %347 }
 0xb4a   :  { %v350_v48 = vmul.f32 %v2509_v43, %v2361_v50  ;;  %v433_v49 = vmul.f32 %v2394_v20, %v2509_v43  ;;  %v513_v51 = vmul.f32 %v2428_v57, %v2509_v43  ;;  %v593_v28 = vmul.f32 %v2446_v24, %v2509_v43  ;;  %v2085_v20 = vld [vmem:[%s2758_s6 + $0x18] sm:$0xff]  }
 0xb4b   :  { %1957 = vmatpush3.bf16.msra.mxu0 %v2082_v42 }
 0xb4c   :  { %1958 = vmatprep.subr.bf16.mxu0 %v2083_v47 }
 0xb4f   :  { %1959 = vmatpush3.bf16.msra.mxu0 %v2083_v47 }
 0xb50   :  { %1960 = vmatprep.subr.bf16.mxu0 %v2085_v20 }
 0xb53   :  { %1961 = vmatpush3.bf16.msra.mxu0 %v2085_v20 }
 0xb54   :  { %1986 = vmatprep.subr.bf16.mxu0 %v2184_v58 }
 0xc19   :  { %v809_v17 = vpop.f32.mrb[24].mxu0 }
 0xc1a   :  { %v816_v21 = vadd.f32 %v809_v17, %v199_v0  ;;  %v811_v22 = vpop.f32.mrb[25].mxu0 }
 0xc1b   :  { %v817_v23 = vadd.f32 %v811_v22, %v201_v14  ;;  %v813_v26 = vpop.f32.mrb[26].mxu0  ;;  %v2586_v22 = vld [vmem:[%s2760_s8] ss:$0 sm:$0xff]  ;;  %s2186_s8 = smov 32  }
 0xc1c   :  { %2133 = vtanh.f32 %v816_v21  ;;  %v814_v36 = vpop.f32.mrb[27].mxu0 }
 0xc1d   :  { %2135 = vtanh.f32 %v817_v23 }
 0xc26   :  { %v2134_v37 = vpop.eup %2133 }
 0xc27   :  { %v820_v38 = vmul.f32 0.5, %v2134_v37  ;;  %v2136_v40 = vpop.eup %2135 }
 0xc28   :  { %v822_v24 = vmul.f32 0.5, %v2136_v40 }
 0xc29   :  { %v821_v39 = vadd.f32 0.5, %v820_v38 }
 0xc2a   :  { %v823_v62 = vadd.f32 0.5, %v822_v24 }
 0xc2b   :  { %v825_v41 = vmul.f32 %v2136_v40, %v821_v39  ;;  %v824_v44 = vmul.f32 %v821_v39, %v750_v5 }
 0xc2d   :  { %827 = vrot.lane.b32.xlu0 %v825_v41, %s2183_s3 }
 0xc31   :  { %351 = vrot.lane.b32.xlu0 %v1847_v32, %s2183_s3 }
 0xc9f   :  { %v828_v45 = vpop.permute.xlu0 %827 }
 0xca0   :  { %v2511_v46 = vadd.f32 %v828_v45, %v824_v44 }
 0xca2   :  { %2137 = vtanh.f32 %v2511_v46 }
 0xca3   :  { %v2525_v52 = vpop.permute.xlu0 %351 }
 0xca4   :  { %v354_v29 = vadd.f32 %v2525_v52, %v350_v48  ;;  %v434_v53 = vadd.f32 %v433_v49, %v2525_v52  ;;  %v514_v50 = vadd.f32 %v513_v51, %v2525_v52  ;;  %v594_v54 = vadd.f32 %v593_v28, %v2525_v52 }
 0xca6   :  { %v355_v57 = vmax.f32 %v354_v29, 0.0  ;;  %v435_v56 = vmax.f32 %v434_v53, 0.0  ;;  %v515_v60 = vmax.f32 %v514_v50, 0.0  ;;  %v595_v61 = vmax.f32 %v594_v54, 0.0 }
 0xca8   :  { %v1906_v59 = vpack.c.bf16 %v355_v57, %v355_v57  ;;  %v1907_v4 = vpack.c.bf16 %v435_v56, %v435_v56  ;;  %v1908_v63 = vpack.c.bf16 %v515_v60, %v515_v60  ;;  %v1909_v12 = vpack.c.bf16 %v595_v61, %v595_v61 }
 0xcaa   :  { %360 = vrot.lane.b32.xlu1 %v1906_v59, %s2183_s3  ;;  %440 = vrot.lane.b32.xlu0 %v1907_v4, %s2183_s3 }
 0xcac   :  { %v2138_v9 = vpop.eup %2137 }
 0xcad   :  { %v2538_v15 = vmul.f32 %v2138_v9, %v823_v62  ;;  %v673_v62 = vmul.f32 %v2465_v55, %v2509_v43 }
 0xcae   :  { %520 = vrot.lane.b32.xlu1 %v1908_v63, %s2183_s3  ;;  %600 = vrot.lane.b32.xlu0 %v1909_v12, %s2183_s3 }
 0xcaf   :  { %v848_v16 = vpack.c.bf16 %v2538_v15, %v2538_v15  ;;  %v674_v9 = vadd.f32 %v673_v62, %v2525_v52  ;;  %v833_v63 = vmul.f32 %v2538_v15, %v2509_v43 }
 0xcb2   :  { %850 = vrot.lane.b32.xlu1 %v848_v16, %s2183_s3  ;;  %v675_v16 = vmax.f32 %v674_v9, 0.0 }
 0xd1c   :  { %v361_v1 = vpop.permute.xlu1 %360  ;;  %v441_v18 = vpop.permute.xlu0 %440 }
 0xd1d   :  { %364 = vst.msk [vmem:[#allocation4] sm:$0xf] %vm363_vm4, %v361_v1  ;;  %444 = vst.msk [vmem:[#allocation4 + $0x4] sm:$0xf] %vm363_vm4, %v441_v18  ;;  %v834_v1 = vadd.f32 %v833_v63, %v2525_v52  ;;  %v1910_v18 = vpack.c.bf16 %v675_v16, %v675_v16 }
 0xd20   :  { %v521_v2 = vpop.permute.xlu1 %520  ;;  %v601_v19 = vpop.permute.xlu0 %600 }
 0xd21   :  { %524 = vst.msk [vmem:[#allocation4 + $0x8] sm:$0xf] %vm363_vm4, %v521_v2  ;;  %604 = vst.msk [vmem:[#allocation4 + $0xc] sm:$0xf] %vm363_vm4, %v601_v19  ;;  %v835_v2 = vmax.f32 %v834_v1, 0.0 }
 0xd23   :  { %v1912_v19 = vpack.c.bf16 %v835_v2, %v835_v2 }
 0xd24   :  { %v851_v5 = vpop.permute.xlu1 %850  ;;  %v2086_v31 = vld [vmem:[#allocation4] sm:$0xff]  }
 0xd25   :  { %1869 = vmatmul.mubr.msk.bf16.vlgmr.msra.gmra.mrb[16].mxu1 %vm285_vm3, %v851_v5  ;;  %1962 = vmatprep.mubr.msk.bf16.mxu0 %vm285_vm3, %v2086_v31 }
 0xd26   :  { %1971 = vmatpush3.bf16.msra.mxu1 %v2552_v30  ;;  %1974 = vmatprep.mubr.msk.bf16.mxu1 %vm2185_vm5, %v2184_v58 }
 0xd27   :  { %1972 = vmatprep.subr.bf16.mxu1 %v2184_v58 }
 0xd28   :  { %v2088_v7 = vld [vmem:[#allocation4 + $0x8] sm:$0xff]  }
 0xd29   :  { %1963 = vmatmul.mubr.msk.bf16.vlgmr.msra.gmra.mrb[28].mxu0 %vm285_vm3, %v2088_v7 }
 0xd2a   :  { %1973 = vmatpush3.bf16.msra.mxu1 %v2560_v6  ;;  %1987 = vmatpush3.bf16.msra.mxu0 %v2552_v30 }
 0xd2b   :  { %1978 = vmatprep.subr.bf16.mxu1 %v2184_v58  ;;  %1988 = vmatprep.subr.bf16.mxu0 %v2184_v58 }
 0xd2d   :  { %1975 = vmatmul.mubr.bf16.vlgmr.msra.gmra.mrb[20].mxu1 %v2182_v3  ;;  %v205_v3 = vadd.f32 %v2413_v35, %v2356_v27 }
 0xd2e   :  { %1979 = vmatpush3.bf16.msra.mxu1 %v2552_v30  ;;  %1982 = vmatprep.mubr.msk.bf16.mxu1 %vm2185_vm5, %v2184_v58 }
 0xd2f   :  { %1980 = vmatprep.subr.bf16.mxu1 %v2184_v58  ;;  %1989 = vmatpush3.bf16.msra.mxu0 %v2560_v6 }
 0xd30   :  { %2002 = vmatprep.subr.bf16.mxu0 %v2184_v58 }
 0xd32   :  { %1981 = vmatpush3.bf16.msra.mxu1 %v2560_v6 }
 0xd33   :  { %1994 = vmatprep.subr.bf16.mxu1 %v2184_v58 }
 0xdf8   :  { %v889_v11 = vpop.f32.mrb[16].mxu1 }
 0xdf9   :  { %v896_v13 = vadd.f32 %v889_v11, %v203_v10  ;;  %v891_v0 = vpop.f32.mrb[17].mxu1 }
 0xdfa   :  { %v897_v14 = vadd.f32 %v891_v0, %v205_v3  ;;  %v893_v17 = vpop.f32.mrb[18].mxu1 }
 0xdfb   :  { %2139 = vtanh.f32 %v896_v13  ;;  %v894_v21 = vpop.f32.mrb[19].mxu1 }
 0xdfc   :  { %v2588_v23 = vpop.f32.mrb[28].mxu0  ;;  %2141 = vtanh.f32 %v897_v14 }
 0xdfd   :  { %v1038_v26 = vpop.f32.mrb[29].mxu0 }
 0xdfe   :  { %v1039_v25 = vadd.f32 %v2586_v22, %v1038_v26  ;;  %v2591_v34 = vpop.f32.mrb[30].mxu0 }
 0xdff   :  { %v1041_v35 = vpop.f32.mrb[31].mxu0 }
 0xe00   :  { %v1131_v27 = vpop.f32.mrb[20].mxu1  ;;  %v1042_v56 = vadd.f32 %v2586_v22, %v1041_v35 }
 0xe01   :  { %v1137_v36 = vadd.f32 %v1131_v27, %v1039_v25  ;;  %v1976_v37 = vpop.f32.mrb[21].mxu1 }
 0xe02   :  { %v1134_v38 = vpop.f32.mrb[22].mxu1 }
 0xe03   :  { %2143 = vtanh.f32 %v1137_v36  ;;  %v1977_v39 = vpop.f32.mrb[23].mxu1 }
 0xe05   :  { %v2140_v40 = vpop.eup %2139 }
 0xe06   :  { %v900_v41 = vmul.f32 0.5, %v2140_v40  ;;  %v2142_v33 = vpop.eup %2141 }
 0xe07   :  { %v902_v0 = vmul.f32 0.5, %v2142_v33 }
 0xe08   :  { %v901_v32 = vadd.f32 0.5, %v900_v41 }
 0xe09   :  { %v903_v14 = vadd.f32 0.5, %v902_v0 }
 0xe0a   :  { %v905_v42 = vmul.f32 %v2142_v33, %v901_v32  ;;  %v904_v15 = vmul.f32 %v901_v32, %v2511_v46  ;;  %v753_v46 = vmul.f32 %v2484_v8, %v2509_v43 }
 0xe0c   :  { %v754_v35 = vadd.f32 %v753_v46, %v2525_v52 }
 0xe0d   :  { %v2144_v44 = vpop.eup %2143 }
 0xe0e   :  { %1143 = vrot.lane.b32.xlu0 %v2144_v44, %s2183_s3  ;;  %v1139_v45 = vmul.f32 0.5, %v2144_v44  ;;  %v755_v37 = vmax.f32 %v754_v35, 0.0 }
 0xe10   :  { %v1140_v47 = vadd.f32 0.5, %v1139_v45  ;;  %v1911_v40 = vpack.c.bf16 %v755_v37, %v755_v37 }
 0xe12   :  { %v1141_v51 = vmul.f32 0.0, %v1140_v47 }
 0xe80   :  { %v1144_v48 = vpop.permute.xlu0 %1143 }
 0xe81   :  { %v1146_v49 = vmul.f32 %v1144_v48, %v1140_v47 }
 0xe83   :  { %1148 = vrot.lane.b32.xlu1 %v1146_v49, %s2186_s8 }
 0xef5   :  { %v1149_v28 = vpop.permute.xlu1 %1148 }
 0xef6   :  { %v1151_v29 = vadd.f32 %v1149_v28, %v1141_v51 }
 0xef8   :  { %2145 = vtanh.f32 %v1151_v29 }
 0xf02   :  { %v2146_v53 = vpop.eup %2145 }
 0xf03   :  { %1154 = vrot.lane.b32.xlu0 %v2146_v53, %s2183_s3 }
 0xf75   :  { %v1155_v50 = vpop.permute.xlu0 %1154 }
 0xf76   :  { %v1157_v54 = vmul.f32 %v1155_v50, %v1140_v47 }
 0xf78   :  { %v1160_v20 = vpack.c.bf16 %v1157_v54, %v1157_v54 }
 0xf7a   :  { %1162 = vrot.lane.b32.xlu1 %v1160_v20, %s2186_s8 }
 0xfec   :  { %v1163_v57 = vpop.permute.xlu1 %1162 }
 0xfed   :  { %1983 = vmatmul.mubr.msk.bf16.vlgmr.msra.gmra.mrb[24].mxu1 %vm1094_vm6, %v1163_v57 }
 0xfee   :  { %1995 = vmatpush3.bf16.msra.mxu1 %v2552_v30  ;;  %1998 = vmatprep.mubr.msk.bf16.mxu1 %vm2185_vm5, %v2184_v58 }
 0xfef   :  { %1996 = vmatprep.subr.bf16.mxu1 %v2184_v58 }
 0xff2   :  { %1997 = vmatpush3.bf16.msra.mxu1 %v2560_v6 }
 0xff3   :  { %2010 = vmatprep.subr.bf16.mxu1 %v2184_v58 }
0x10c0   :  { %v1201_v24 = vpop.f32.mrb[24].mxu1 }
0x10c1   :  { %v1207_v59 = vadd.f32 %v1201_v24, %v1042_v56  ;;  %v1984_v4 = vpop.f32.mrb[25].mxu1 }
0x10c2   :  { %v1204_v60 = vpop.f32.mrb[26].mxu1 }
0x10c3   :  { %2147 = vtanh.f32 %v1207_v59  ;;  %v1985_v61 = vpop.f32.mrb[27].mxu1 }
0x10cd   :  { %v2148_v12 = vpop.eup %2147 }
0x10ce   :  { %1213 = vrot.lane.b32.xlu0 %v2148_v12, %s2183_s3  ;;  %v1209_v55 = vmul.f32 0.5, %v2148_v12 }
0x10d0   :  { %v1210_v5 = vadd.f32 0.5, %v1209_v55 }
0x10d2   :  { %907 = vrot.lane.b32.xlu0 %v905_v42, %s2183_s3  ;;  %v1211_v26 = vmul.f32 %v1210_v5, %v1151_v29  ;;  %v1047_v29 = vadd.f32 %v2588_v23, %v2586_v22 }
0x10d6   :  { %680 = vrot.lane.b32.xlu0 %v1910_v18, %s2183_s3  ;;  %v1050_v18 = vadd.f32 %v2591_v34, %v2586_v22 }
0x10da   :  { %840 = vrot.lane.b32.xlu0 %v1912_v19, %s2183_s3 }
0x1140   :  { %v1214_v31 = vpop.permute.xlu0 %1213 }
0x1141   :  { %v1216_v7 = vmul.f32 %v1214_v31, %v1210_v5 }
0x1143   :  { %1218 = vrot.lane.b32.xlu1 %v1216_v7, %s2186_s8 }
0x1144   :  { %v908_v10 = vpop.permute.xlu0 %907 }
0x1145   :  { %v910_v3 = vadd.f32 %v908_v10, %v904_v15 }
0x1147   :  { %2149 = vtanh.f32 %v910_v3 }
0x1148   :  { %v681_v11 = vpop.permute.xlu0 %680 }
0x1149   :  { %684 = vst.msk [vmem:[#allocation4 + $0x10] sm:$0xf] %vm363_vm4, %v681_v11 }
0x114c   :  { %v841_v13 = vpop.permute.xlu0 %840 }
0x114d   :  { %844 = vst.msk [vmem:[#allocation4 + $0x18] sm:$0xf] %vm363_vm4, %v841_v13 }
0x1151   :  { %v2150_v17 = vpop.eup %2149 }
0x1152   :  { %v912_v21 = vmul.f32 %v2150_v17, %v903_v14 }
0x1154   :  { %v913_v36 = vmul.f32 %v912_v21, %v2509_v43 }
0x1156   :  { %v914_v38 = vadd.f32 %v913_v36, %v2525_v52 }
0x1158   :  { %v915_v41 = vmax.f32 %v914_v38, 0.0 }
0x115a   :  { %v1913_v32 = vpack.c.bf16 %v915_v41, %v915_v41 }
0x11b5   :  { %v1219_v25 = vpop.permute.xlu1 %1218 }
0x11b6   :  { %v1221_v27 = vadd.f32 %v1219_v25, %v1211_v26 }
0x11b8   :  { %2151 = vtanh.f32 %v1221_v27 }
0x11c2   :  { %v2152_v39 = vpop.eup %2151 }
0x11c3   :  { %1224 = vrot.lane.b32.xlu1 %v2152_v39, %s2183_s3 }
0x11c7   :  { %760 = vrot.lane.b32.xlu1 %v1911_v40, %s2183_s3 }
0x11cb   :  { %920 = vrot.lane.b32.xlu1 %v1913_v32, %s2183_s3 }
0x1235   :  { %v1225_v33 = vpop.permute.xlu1 %1224 }
0x1236   :  { %v1227_v42 = vmul.f32 %v1225_v33, %v1210_v5 }
0x1238   :  { %v1230_v8 = vpack.c.bf16 %v1227_v42, %v1227_v42 }
0x1239   :  { %v761_v44 = vpop.permute.xlu1 %760 }
0x123a   :  { %764 = vst.msk [vmem:[#allocation4 + $0x14] sm:$0xf] %vm363_vm4, %v761_v44  ;;  %1232 = vrot.lane.b32.xlu0 %v1230_v8, %s2186_s8 }
0x123d   :  { %v921_v43 = vpop.permute.xlu1 %920 }
0x123e   :  { %924 = vst.msk [vmem:[#allocation4 + $0x1c] sm:$0xf] %vm363_vm4, %v921_v43 }
0x1241   :  { %v2089_v52 = vld [vmem:[#allocation4 + $0x10] sm:$0xff]  }
0x1242   :  { %1966 = vmatprep.mubr.msk.bf16.mxu0 %vm285_vm3, %v2089_v52 }
0x1245   :  { %v2090_v45 = vld [vmem:[#allocation4 + $0x18] sm:$0xff]  }
0x1246   :  { %1967 = vmatmul.mubr.msk.bf16.gmra.mrb[32].mxu0 %vm285_vm3, %v2090_v45 }
0x1247   :  { %1990 = vmatprep.mubr.msk.bf16.mxu0 %vm2185_vm5, %v2184_v58 }
0x12ac   :  { %v1233_v47 = vpop.permute.xlu0 %1232 }
0x12ad   :  { %1991 = vmatmul.mubr.msk.bf16.vlgmr.msra.gmra.mrb[36].mxu0 %vm1094_vm6, %v1233_v47 }
0x12ae   :  { %2003 = vmatpush3.bf16.msra.mxu0 %v2552_v30  ;;  %2006 = vmatprep.mubr.msk.bf16.mxu0 %vm2185_vm5, %v2184_v58 }
0x12af   :  { %2004 = vmatprep.subr.bf16.mxu0 %v2184_v58 }
0x12b2   :  { %2005 = vmatpush3.bf16.msra.mxu0 %v2560_v6 }
0x12b3   :  { %2018 = vmatprep.subr.bf16.mxu0 %v2184_v58 }
0x1319   :  { %v2641_v48 = vpop.f32.mrb[32].mxu0 }
0x131a   :  { %v2643_v49 = vpop.f32.mrb[33].mxu0 }
0x131b   :  { %v2645_v51 = vpop.f32.mrb[34].mxu0 }
0x131c   :  { %v2647_v28 = vpop.f32.mrb[35].mxu0 }
0x1380   :  { %v1271_v53 = vpop.f32.mrb[36].mxu0 }
0x1381   :  { %v1277_v50 = vadd.f32 %v1271_v53, %v1047_v29  ;;  %v1992_v54 = vpop.f32.mrb[37].mxu0  ;;  %v1058_v29 = vadd.f32 %v2586_v22, %v2647_v28 }
0x1382   :  { %v1274_v20 = vpop.f32.mrb[38].mxu0 }
0x1383   :  { %2153 = vtanh.f32 %v1277_v50  ;;  %v1993_v57 = vpop.f32.mrb[39].mxu0 }
0x138d   :  { %v2154_v56 = vpop.eup %2153 }
0x138e   :  { %1283 = vrot.lane.b32.xlu1 %v2154_v56, %s2183_s3  ;;  %v1279_v24 = vmul.f32 0.5, %v2154_v56 }
0x1390   :  { %v1280_v59 = vadd.f32 0.5, %v1279_v24 }
0x1392   :  { %v1281_v61 = vmul.f32 %v1280_v59, %v1221_v27  ;;  %v1055_v27 = vadd.f32 %v2586_v22, %v2643_v49 }
0x1400   :  { %v1284_v4 = vpop.permute.xlu1 %1283 }
0x1401   :  { %v1286_v60 = vmul.f32 %v1284_v4, %v1280_v59 }
0x1403   :  { %1288 = vrot.lane.b32.xlu0 %v1286_v60, %s2186_s8 }
0x1475   :  { %v1289_v62 = vpop.permute.xlu0 %1288 }
0x1476   :  { %v1291_v9 = vadd.f32 %v1289_v62, %v1281_v61 }
0x1478   :  { %2155 = vtanh.f32 %v1291_v9 }
0x1482   :  { %v2156_v23 = vpop.eup %2155 }
0x1483   :  { %1294 = vrot.lane.b32.xlu1 %v2156_v23, %s2183_s3 }
0x14f5   :  { %v1295_v63 = vpop.permute.xlu1 %1294 }
0x14f6   :  { %v1297_v12 = vmul.f32 %v1295_v63, %v1280_v59 }
0x14f8   :  { %v1300_v16 = vpack.c.bf16 %v1297_v12, %v1297_v12  ;;  %v1063_v12 = vadd.f32 %v2641_v48, %v2586_v22 }
0x14fa   :  { %1302 = vrot.lane.b32.xlu0 %v1300_v16, %s2186_s8 }
0x156c   :  { %v1303_v1 = vpop.permute.xlu0 %1302 }
0x156d   :  { %1999 = vmatmul.mubr.msk.bf16.vlgmr.msra.gmra.mrb[28].mxu1 %vm1094_vm6, %v1303_v1 }
0x156e   :  { %2011 = vmatpush3.bf16.msra.mxu1 %v2552_v30  ;;  %2014 = vmatprep.mubr.msk.bf16.mxu1 %vm2185_vm5, %v2184_v58 }
0x156f   :  { %2012 = vmatprep.subr.bf16.mxu1 %v2184_v58 }
0x1572   :  { %2013 = vmatpush3.bf16.msra.mxu1 %v2560_v6 }
0x1573   :  { %2026 = vmatprep.subr.bf16.mxu1 %v2184_v58 }
0x1640   :  { %v1341_v2 = vpop.f32.mrb[28].mxu1 }
0x1641   :  { %v1347_v19 = vadd.f32 %v1341_v2, %v1050_v18  ;;  %v2000_v55 = vpop.f32.mrb[29].mxu1 }
0x1642   :  { %v1344_v5 = vpop.f32.mrb[30].mxu1 }
0x1643   :  { %2157 = vtanh.f32 %v1347_v19  ;;  %v2001_v31 = vpop.f32.mrb[31].mxu1 }
0x164d   :  { %v2158_v7 = vpop.eup %2157 }
0x164e   :  { %1353 = vrot.lane.b32.xlu1 %v2158_v7, %s2183_s3  ;;  %v1349_v15 = vmul.f32 0.5, %v2158_v7 }
0x1650   :  { %v1350_v10 = vadd.f32 0.5, %v1349_v15 }
0x1652   :  { %v1351_v13 = vmul.f32 %v1350_v10, %v1291_v9 }
0x16c0   :  { %v1354_v3 = vpop.permute.xlu1 %1353 }
0x16c1   :  { %v1356_v11 = vmul.f32 %v1354_v3, %v1350_v10 }
0x16c3   :  { %1358 = vrot.lane.b32.xlu0 %v1356_v11, %s2186_s8 }
0x1735   :  { %v1359_v0 = vpop.permute.xlu0 %1358 }
0x1736   :  { %v1361_v14 = vadd.f32 %v1359_v0, %v1351_v13 }
0x1738   :  { %2159 = vtanh.f32 %v1361_v14 }
0x1742   :  { %v2160_v34 = vpop.eup %2159 }
0x1743   :  { %1364 = vrot.lane.b32.xlu1 %v2160_v34, %s2183_s3 }
0x17b5   :  { %v1365_v17 = vpop.permute.xlu1 %1364 }
0x17b6   :  { %v1367_v21 = vmul.f32 %v1365_v17, %v1350_v10  ;;  %v1066_v17 = vadd.f32 %v2645_v51, %v2586_v22  ;;  %v2091_v22 = vld [vmem:[%s2761_s9] sm:$0xff]   ;;  %v2092_v51 = vld [vmem:[%s2761_s9 + $0x8] sm:$0xff]  }
0x17b8   :  { %v1370_v26 = vpack.c.bf16 %v1367_v21, %v1367_v21 }
0x17ba   :  { %1372 = vrot.lane.b32.xlu0 %v1370_v26, %s2186_s8 }
0x182c   :  { %v1373_v25 = vpop.permute.xlu0 %1372 }
0x182d   :  { %2007 = vmatmul.mubr.msk.bf16.vlgmr.msra.gmra.mrb[40].mxu0 %vm1094_vm6, %v1373_v25 }
0x182e   :  { %2019 = vmatpush3.bf16.msra.mxu0 %v2552_v30  ;;  %2022 = vmatprep.mubr.msk.bf16.mxu0 %vm2185_vm5, %v2184_v58 }
0x182f   :  { %2020 = vmatprep.subr.bf16.mxu0 %v2184_v58 }
0x1832   :  { %2021 = vmatpush3.bf16.msra.mxu0 %v2560_v6 }
0x1833   :  { %2034 = vmatprep.subr.bf16.mxu0 %v2184_v58 }
0x1900   :  { %v1411_v46 = vpop.f32.mrb[40].mxu0 }
0x1901   :  { %v1417_v35 = vadd.f32 %v1411_v46, %v1055_v27  ;;  %v2008_v36 = vpop.f32.mrb[41].mxu0 }
0x1902   :  { %v1414_v37 = vpop.f32.mrb[42].mxu0 }
0x1903   :  { %2161 = vtanh.f32 %v1417_v35  ;;  %v2009_v38 = vpop.f32.mrb[43].mxu0 }
0x190d   :  { %v2162_v39 = vpop.eup %2161 }
0x190e   :  { %1423 = vrot.lane.b32.xlu1 %v2162_v39, %s2183_s3  ;;  %v1419_v40 = vmul.f32 0.5, %v2162_v39 }
0x1910   :  { %v1420_v41 = vadd.f32 0.5, %v1419_v40 }
0x1912   :  { %v1421_v42 = vmul.f32 %v1420_v41, %v1361_v14 }
0x1980   :  { %v1424_v32 = vpop.permute.xlu1 %1423 }
0x1981   :  { %v1426_v33 = vmul.f32 %v1424_v32, %v1420_v41 }
0x1983   :  { %1428 = vrot.lane.b32.xlu0 %v1426_v33, %s2186_s8 }
0x19f5   :  { %v1429_v8 = vpop.permute.xlu0 %1428 }
0x19f6   :  { %v1431_v44 = vadd.f32 %v1429_v8, %v1421_v42  ;;  %v2093_v42 = vld [vmem:[%s2762_s11] sm:$0xff]   ;;  %v2094_v8 = vld [vmem:[%s2762_s11 + $0x8] sm:$0xff]  }
0x19f8   :  { %2163 = vtanh.f32 %v1431_v44 }
0x1a02   :  { %v2164_v43 = vpop.eup %2163 }
0x1a03   :  { %1434 = vrot.lane.b32.xlu1 %v2164_v43, %s2183_s3 }
0x1a75   :  { %v1435_v52 = vpop.permute.xlu1 %1434 }
0x1a76   :  { %v1437_v45 = vmul.f32 %v1435_v52, %v1420_v41 }
0x1a78   :  { %v1440_v47 = vpack.c.bf16 %v1437_v45, %v1437_v45 }
0x1a7a   :  { %1442 = vrot.lane.b32.xlu0 %v1440_v47, %s2186_s8  ;;  %v2095_v47 = vld [vmem:[%s2762_s11 + $0x10] sm:$0xff]  }
0x1aec   :  { %v1443_v49 = vpop.permute.xlu0 %1442 }
0x1aed   :  { %2015 = vmatmul.mubr.msk.bf16.vlgmr.msra.gmra.mrb[32].mxu1 %vm1094_vm6, %v1443_v49  ;;  %v2096_v49 = vld [vmem:[%s2762_s11 + $0x18] sm:$0xff]  }
0x1aee   :  { %2027 = vmatpush3.bf16.msra.mxu1 %v2552_v30  ;;  %2030 = vmatprep.mubr.msk.bf16.mxu1 %vm2185_vm5, %v2184_v58 }
0x1aef   :  { %2028 = vmatprep.subr.bf16.mxu1 %v2184_v58 }
0x1af2   :  { %2029 = vmatpush3.bf16.msra.mxu1 %v2560_v6 }
0x1af3   :  { %2042 = vmatprep.subr.bf16.mxu1 %v2184_v58 }
0x1bc0   :  { %v1481_v53 = vpop.f32.mrb[32].mxu1 }
0x1bc1   :  { %v1487_v50 = vadd.f32 %v1481_v53, %v1058_v29  ;;  %v2016_v54 = vpop.f32.mrb[33].mxu1  ;;  %v1893_v29 = vld [vmem:[%s2763_s10] ss:$0 sm:$0xff] }
0x1bc2   :  { %v1484_v20 = vpop.f32.mrb[34].mxu1 }
0x1bc3   :  { %2165 = vtanh.f32 %v1487_v50  ;;  %v2017_v57 = vpop.f32.mrb[35].mxu1 }
0x1bcd   :  { %v2166_v56 = vpop.eup %2165 }
0x1bce   :  { %1493 = vrot.lane.b32.xlu1 %v2166_v56, %s2183_s3  ;;  %v1489_v30 = vmul.f32 0.5, %v2166_v56 }
0x1bd0   :  { %v1490_v24 = vadd.f32 0.5, %v1489_v30 }
0x1bd2   :  { %v1491_v6 = vmul.f32 %v1490_v24, %v1431_v44 }
0x1c40   :  { %v1494_v59 = vpop.permute.xlu1 %1493 }
0x1c41   :  { %v1496_v4 = vmul.f32 %v1494_v59, %v1490_v24 }
0x1c43   :  { %1498 = vrot.lane.b32.xlu0 %v1496_v4, %s2186_s8 }
0x1cb5   :  { %v1499_v60 = vpop.permute.xlu0 %1498 }
0x1cb6   :  { %v1501_v61 = vadd.f32 %v1499_v60, %v1491_v6 }
0x1cb8   :  { %2167 = vtanh.f32 %v1501_v61 }
0x1cc2   :  { %v2168_v28 = vpop.eup %2167 }
0x1cc3   :  { %1504 = vrot.lane.b32.xlu1 %v2168_v28, %s2183_s3 }
0x1d35   :  { %v1505_v62 = vpop.permute.xlu1 %1504 }
0x1d36   :  { %v1507_v9 = vmul.f32 %v1505_v62, %v1490_v24  ;;  %v1897_v24 = vld [vmem:[%s2765_s12] ss:$0 sm:$0xff] }
0x1d38   :  { %v1510_v23 = vpack.c.bf16 %v1507_v9, %v1507_v9 }
0x1d3a   :  { %1512 = vrot.lane.b32.xlu0 %v1510_v23, %s2186_s8 }
0x1dac   :  { %v1513_v63 = vpop.permute.xlu0 %1512 }
0x1dad   :  { %2023 = vmatmul.mubr.msk.bf16.vlgmr.msra.gmra.mrb[44].mxu0 %vm1094_vm6, %v1513_v63 }
0x1dae   :  { %2038 = vmatprep.mubr.msk.bf16.mxu0 %vm2185_vm5, %v2184_v58  ;;  %2035 = vmatpush3.bf16.msra.mxu0 %v2091_v22 }
0x1daf   :  { %2036 = vmatprep.subr.bf16.mxu0 %v2184_v58 }
0x1db2   :  { %2037 = vmatpush3.bf16.msra.mxu0 %v2092_v51 }
0x1e80   :  { %v1551_v16 = vpop.f32.mrb[44].mxu0 }
0x1e81   :  { %v1557_v1 = vadd.f32 %v1551_v16, %v1063_v12  ;;  %v2024_v18 = vpop.f32.mrb[45].mxu0 }
0x1e82   :  { %v1554_v2 = vpop.f32.mrb[46].mxu0 }
0x1e83   :  { %2169 = vtanh.f32 %v1557_v1  ;;  %v2025_v19 = vpop.f32.mrb[47].mxu0 }
0x1e8d   :  { %v2170_v55 = vpop.eup %2169 }
0x1e8e   :  { %1563 = vrot.lane.b32.xlu1 %v2170_v55, %s2183_s3  ;;  %v1559_v5 = vmul.f32 0.5, %v2170_v55 }
0x1e90   :  { %v1560_v31 = vadd.f32 0.5, %v1559_v5 }
0x1e92   :  { %v1561_v10 = vmul.f32 %v1560_v31, %v1501_v61  ;;  %v1903_v61 = vld [vmem:[%s2766_s13] ss:$0 sm:$0xff] }
0x1f00   :  { %v1564_v7 = vpop.permute.xlu1 %1563 }
0x1f01   :  { %v1566_v15 = vmul.f32 %v1564_v7, %v1560_v31 }
0x1f03   :  { %1568 = vrot.lane.b32.xlu0 %v1566_v15, %s2186_s8 }
0x1f75   :  { %v1569_v3 = vpop.permute.xlu0 %1568 }
0x1f76   :  { %v1571_v11 = vadd.f32 %v1569_v3, %v1561_v10 }
0x1f78   :  { %2171 = vtanh.f32 %v1571_v11 }
0x1f82   :  { %v2172_v48 = vpop.eup %2171 }
0x1f83   :  { %1574 = vrot.lane.b32.xlu1 %v2172_v48, %s2183_s3 }
0x1ff5   :  { %v1575_v13 = vpop.permute.xlu1 %1574 }
0x1ff6   :  { %v1577_v0 = vmul.f32 %v1575_v13, %v1560_v31 }
0x1ff8   :  { %v1580_v14 = vpack.c.bf16 %v1577_v0, %v1577_v0 }
0x1ffa   :  { %1582 = vrot.lane.b32.xlu0 %v1580_v14, %s2186_s8 }
0x206c   :  { %v1583_v34 = vpop.permute.xlu0 %1582 }
0x206d   :  { %2031 = vmatmul.mubr.msk.bf16.vlgmr.msra.gmra.mrb[36].mxu1 %vm1094_vm6, %v1583_v34 }
0x206e   :  { %2050 = vmatprep.mubr.msk.bf16.mxu1 %vm2185_vm5, %v2184_v58  ;;  %2043 = vmatpush3.bf16.msra.mxu1 %v2093_v42 }
0x206f   :  { %2044 = vmatprep.subr.bf16.mxu1 %v2184_v58 }
0x2072   :  { %2045 = vmatpush3.bf16.msra.mxu1 %v2094_v8 }
0x2073   :  { %2046 = vmatprep.subr.bf16.mxu1 %v2184_v58 }
0x2076   :  { %2047 = vmatpush3.bf16.msra.mxu1 %v2095_v47 }
0x2077   :  { %2048 = vmatprep.subr.bf16.mxu1 %v2184_v58  ;;  %v20_v58 = vstv %s2764_s14 }
0x2078   :  { %21 = vst [vmem:[#allocation5] sm:$0x1] %v20_v58 }
0x207a   :  { %2049 = vmatpush3.bf16.msra.mxu1 %v2096_v49 }
0x207f   :  { %v1904_v63 = vld [vmem:[#allocation5] ss:$0 sm:$0xff] }
0x2140   :  { %v1621_v21 = vpop.f32.mrb[36].mxu1 }
0x2141   :  { %v1627_v26 = vadd.f32 %v1621_v21, %v1066_v17  ;;  %v2032_v25 = vpop.f32.mrb[37].mxu1 }
0x2142   :  { %v1624_v27 = vpop.f32.mrb[38].mxu1 }
0x2143   :  { %2173 = vtanh.f32 %v1627_v26  ;;  %v2033_v46 = vpop.f32.mrb[39].mxu1 }
0x214d   :  { %v2174_v35 = vpop.eup %2173 }
0x214e   :  { %1633 = vrot.lane.b32.xlu1 %v2174_v35, %s2183_s3  ;;  %v1629_v36 = vmul.f32 0.5, %v2174_v35 }
0x2150   :  { %v1630_v37 = vadd.f32 0.5, %v1629_v36 }
0x2152   :  { %v1631_v40 = vmul.f32 %v1630_v37, %v1571_v11 }
0x21c0   :  { %v1634_v38 = vpop.permute.xlu1 %1633 }
0x21c1   :  { %v1636_v39 = vmul.f32 %v1634_v38, %v1630_v37 }
0x21c3   :  { %1638 = vrot.lane.b32.xlu0 %v1636_v39, %s2186_s8 }
0x2235   :  { %v1639_v41 = vpop.permute.xlu0 %1638 }
0x2236   :  { %v1641_v32 = vadd.f32 %v1639_v41, %v1631_v40 }
0x2238   :  { %2175 = vtanh.f32 %v1641_v32 }
0x2242   :  { %v2176_v33 = vpop.eup %2175 }
0x2243   :  { %1644 = vrot.lane.b32.xlu1 %v2176_v33, %s2183_s3 }
0x22b5   :  { %v1645_v44 = vpop.permute.xlu1 %1644 }
0x22b6   :  { %v1647_v43 = vmul.f32 %v1645_v44, %v1630_v37 }
0x22b8   :  { %v1648_v52 = vpack.c.bf16 %v1647_v43, %v1647_v43 }
0x22ba   :  { %1661 = vrot.lane.b32.xlu0 %v1648_v52, %s2186_s8 }
0x232c   :  { %v1662_v45 = vpop.permute.xlu0 %1661 }
0x232d   :  { %2039 = vmatmul.mubr.msk.bf16.vlgmr.msra.gmra.mrb[48].mxu0 %vm1094_vm6, %v1662_v45 }
0x2400   :  { %v1712_v53 = vpop.f32.mrb[48].mxu0 }
0x2401   :  { %v1713_v50 = vadd.f32 %v1893_v29, %v1712_v53  ;;  %v2040_v54 = vpop.f32.mrb[49].mxu0 }
0x2402   :  { %v1715_v20 = vpop.f32.mrb[50].mxu0 }
0x2403   :  { %v1718_v57 = vmax.f32 %v1713_v50, 0.0  ;;  %v2041_v56 = vpop.f32.mrb[51].mxu0 }
0x2405   :  { %v1719_v30 = vpack.c.bf16 %v1718_v57, %v1718_v57 }
0x2407   :  { %2051 = vmatmul.mubr.msk.bf16.vlgmr.msra.gmra.mrb[40].mxu1 %vm285_vm3, %v1719_v30 }
0x24da   :  { %v1796_v59 = vpop.f32.mrb[40].mxu1 }
0x24db   :  { %v1797_v4 = vadd.f32 %v1897_v24, %v1796_v59  ;;  %v2052_v6 = vpop.f32.mrb[41].mxu1 }
0x24dc   :  { %v1799_v60 = vpop.f32.mrb[42].mxu1 }
0x24dd   :  { %v1802_v28 = vmax.f32 %v1797_v4, 0.0  ;;  %v2053_v62 = vpop.f32.mrb[43].mxu1 }
0x24df   :  { %v1810_v9 = vmul.f32 %v1903_v61, %v1802_v28 }
0x24e1   :  { %v1811_v23 = vsel %vm1094_vm6, %v1810_v9, 0.0 }
0x24e2   :  { %1812 = vadd.xlane.f32.xlu1 %v1811_v23 }
0x256f   :  { %v1813_v12 = vpop.xlane.xlu1 %1812 }
0x2570   :  { %v1821_v16 = vadd.f32 %v1904_v63, %v1813_v12 }
0x2572   :  { %v1905_v1 = vmul.f32 -1.442695, %v1821_v16 }
0x2574   :  { %2177 = vpow2.f32 %v1905_v1 }
0x257e   :  { %v2178_v18 = vpop.eup %2177 }
0x257f   :  { %v1825_v2 = vadd.f32 1.0, %v2178_v18 }
0x2581   :  { %2179 = vrcp.f32 %v1825_v2 }
0x258b   :  { %v2180_v19 = vpop.eup %2179 }
0x258c   :  { %1829 = vst.msk [vmem:[%s2767_s15] sm:$0xff] %vm1828_vm7, %v2180_v19 }

</bundles_post_ra>
